<compile_context>
chip_gen: v5e
topology: v5e:2x2
jax: 0.10.0
libtpu: 0.0.40
codegen_flags: <defaults>
</compile_context>

<pallas_src>
import jax
import jax.numpy as jnp
import numpy as np
from jax.experimental import pallas as pl
from jax.experimental.pallas import tpu as pltpu

EPS = 1e-5
LANES = 128


def _round_up(x, m):
    return ((x + m - 1) // m) * m


# ----------------------------------------------------------------------------
# Fused stage kernel: chain of conv+bias+ReLU blocks over ping-pong VMEM buffers.
# One grid step = one batch element; activations never leave VMEM.
# ----------------------------------------------------------------------------
def _make_stage_kernel(meta, ho, wo, cpad):
    nb = len(meta)

    def kernel(x_ref, *rest):
        wb_refs = rest[:2 * nb]          # interleaved (weight, bias) per block
        o_ref = rest[2 * nb]
        bufs = rest[2 * nb + 1:]         # two ping-pong activation buffers

        zdt = bufs[0].dtype
        hbuf, wbuf, _ = bufs[0].shape

        # Zero ONLY the 1-px halo ring (the interiors below are fully
        # overwritten every step, so no full-buffer zero fill is needed).
        # Left halo uses 2 columns so the bf16 interior store starts word-
        # aligned (column offset 2).
        zrow = jnp.zeros((1, wbuf, cpad), zdt)
        zcol = jnp.zeros((hbuf, 2, cpad), zdt)
        for buf in bufs:
            buf[0:1, :, :] = zrow                     # top halo row
            buf[ho + 1:ho + 2, :, :] = zrow           # bottom halo row
            buf[:, 0:2, :] = zcol                     # left halo cols
            buf[:, wo + 2:wo + 4, :] = zcol           # right halo cols

        # Stage input (space-to-depth packed + lane padded by the wrapper).
        bufs[0][1:1 + ho, 2:2 + wo, 0:meta[0]["cin_pad"]] = x_ref[0].astype(zdt)

        for b, m in enumerate(meta):
            w_ref = wb_refs[2 * b]
            b_ref = wb_refs[2 * b + 1]
            src = bufs[b % 2]
            cin_p, cout_p = m["cin_pad"], m["cout_pad"]

            # Per-tap MXU matmuls accumulated in f32 (no im2col concat copy).
            acc = None
            for t, (dy, dx) in enumerate(m["taps"]):
                tap = src[dy:dy + ho, 1 + dx:1 + dx + wo, 0:cin_p]
                part = jnp.dot(tap.reshape(ho * wo, cin_p),
                               w_ref[t * cin_p:(t + 1) * cin_p, :],
                               preferred_element_type=jnp.float32)
                acc = part if acc is None else acc + part

            act = jnp.maximum(acc + b_ref[...], 0.0)  # bias + ReLU in f32
            if b + 1 < nb:
                # Inter-block activation stays bf16 in VMEM.
                # Note: bf16 rounding compounds over very deep stages; verify
                # vs an f32 reference before trusting 14-16-block stages.
                bufs[(b + 1) % 2][1:1 + ho, 2:2 + wo, 0:cout_p] = (
                    act.reshape(ho, wo, cout_p).astype(zdt))
            else:
                o_ref[0] = act.reshape(ho, wo, cout_p).astype(o_ref.dtype)

    return kernel


# ----------------------------------------------------------------------------
# Parameter construction & BN fusion glue (plain JAX / numpy; tiny tensors)
# ----------------------------------------------------------------------------
def _bn_params(key, c):
    k0, k1, k2, k3 = jax.random.split(key, 4)
    gamma = jax.random.uniform(k0, (c,), jnp.float32, 0.5, 1.5)
    beta = jax.random.normal(k1, (c,), jnp.float32) * 0.1
    mean = jax.random.normal(k2, (c,), jnp.float32) * 0.1
    var = jax.random.uniform(k3, (c,), jnp.float32, 0.5, 1.5)
    return gamma, beta, mean, var


def make_block_params(key, cin, cout, stride):
    k = jax.random.split(key, 5)
    p = {
        "cin": cin, "cout": cout, "stride": stride,
        "w3": jax.random.normal(k[0], (cout, cin, 3, 3), jnp.float32) * 0.1,
        "bn3": _bn_params(k[1], cout),
        "w1": jax.random.normal(k[2], (cout, cin, 1, 1), jnp.float32) * 0.1,
        "bn1": _bn_params(k[3], cout),
        "has_id": (cin == cout and stride == 1),
    }
    if p["has_id"]:
        p["bnid"] = _bn_params(k[4], cin)
    return p


def make_stage_params(key, in_channels, out_channels, num_blocks, stride):
    strides = [stride] + [1] * (num_blocks - 1)
    params, cin = [], in_channels
    for i, s in enumerate(strides):
        params.append(make_block_params(jax.random.fold_in(key, i), cin,
                                        out_channels, s))
        cin = out_channels
    return params


def _fuse_conv_bn(w_oihw, bn):
    gamma, beta, mean, var = bn
    std = jnp.sqrt(var + EPS)
    t = gamma / std
    return w_oihw * t[:, None, None, None], beta - mean * t


def block_fused_weights(p):
    """Fold the three branches into one 3x3 conv (OIHW) + bias, eval-mode BN."""
    cin = p["cin"]
    w3, b3 = _fuse_conv_bn(p["w3"], p["bn3"])
    w1, b1 = _fuse_conv_bn(p["w1"], p["bn1"])
    w = w3 + jnp.pad(w1, ((0, 0), (0, 0), (1, 1), (1, 1)))
    b = b3 + b1
    if p["has_id"]:
        idk = np.zeros((cin, cin, 3, 3), np.float32)
        for i in range(cin):
            idk[i, i, 1, 1] = 1.0
        wid, bid = _fuse_conv_bn(jnp.asarray(idk), p["bnid"])
        w = w + wid
        b = b + bid
    return w, b  # OIHW, (Cout,)


def _pack_s2d_weight(w_hwio):
    """3x3 stride-2 conv -> 2x2 conv over the 2x2 space-to-depth packed input.

    Packed channel order is (row_phase py, col_phase px, c); tap (ty, tx) reads
    packed pixel (y-1+ty, x-1+tx).  Mapping: ky = 2*ty + py - 1 (valid 0..2),
    same for columns.  Invalid (ty,py)=(0,0) combinations get zero weights.
    """
    _, _, cin, cout = w_hwio.shape
    wp = jnp.zeros((2, 2, 2, 2, cin, cout), w_hwio.dtype)  # (ty,tx,py,px,ci,co)
    for ty in range(2):
        for py in range(2):
            ky = 2 * ty + py - 1
            if not 0 <= ky <= 2:
                continue
            for tx in range(2):
                for px in range(2):
                    kx = 2 * tx + px - 1
                    if not 0 <= kx <= 2:
                        continue
                    wp = wp.at[ty, tx, py, px].set(w_hwio[ky, kx])
    return wp.reshape(2, 2, 4 * cin, cout)


# ----------------------------------------------------------------------------
# Wrapper: RepVGGplusStage.forward  (NCHW in -> NCHW out)
# ----------------------------------------------------------------------------
def stage_forward(x_nchw, block_params):
    x = jnp.transpose(x_nchw, (0, 2, 3, 1)).astype(jnp.float32)  # NHWC
    N, H, W, _ = x.shape
    p0 = block_params[0]
    s0 = p0["stride"]
    assert s0 in (1, 2)
    assert all(p["stride"] == 1 for p in block_params[1:]), \
        "only the first block of a RepVGGplus stage may be strided"
    if s0 == 2:
        assert H % 2 == 0 and W % 2 == 0
    ho, wo = H // s0, W // s0

    # ---- static per-block plan (all blocks share the ho x wo buffer shape) ---
    meta = []
    for i, p in enumerate(block_params):
        packed = (i == 0 and s0 == 2)
        c_in_eff = 4 * p["cin"] if packed else p["cin"]
        taps = ([(dy, dx) for dy in range(2) for dx in range(2)] if packed
                else [(dy, dx) for dy in range(3) for dx in range(3)])
        meta.append(dict(packed=packed,
                         cin_pad=_round_up(c_in_eff, LANES),
                         cout=p["cout"],
                         cout_pad=_round_up(p["cout"], LANES),
                         taps=taps))
    cpad = max(max(m["cin_pad"], m["cout_pad"]) for m in meta)
    cout_final = meta[-1]["cout"]
    cofp = meta[-1]["cout_pad"]

    # ---- fold BN, pack/pad weights, cast bf16 (tiny glue tensors) -----------
    wb_args, wb_specs = [], []
    for p, m in zip(block_params, meta):
        w_oihw, bias = block_fused_weights(p)            # (co,ci,3,3), (co,)
        w_hwio = jnp.transpose(w_oihw, (2, 3, 1, 0))     # (3,3,ci,co)
        wk = _pack_s2d_weight(w_hwio) if m["packed"] else w_hwio
        kh, kw, ci, co = wk.shape
        wk = jnp.pad(wk, ((0, 0), (0, 0), (0, m["cin_pad"] - ci),
                          (0, m["cout_pad"] - co)))
        wmat = wk.reshape(kh * kw * m["cin_pad"],
                          m["cout_pad"]).astype(jnp.bfloat16)
        bvec = jnp.pad(bias, (0, m["cout_pad"] - co)).reshape(
            1, m["cout_pad"]).astype(jnp.float32)
        wb_args += [wmat, bvec]
        # Constant across the grid -> whole-array VMEM residency (no per-step
        # DMA / double buffering).
        wb_specs += [pl.BlockSpec(memory_space=pltpu.MemorySpace.VMEM),
                     pl.BlockSpec(memory_space=pltpu.MemorySpace.VMEM)]

    # ---- stage input: 2x2 space-to-depth folds BOTH conv strides, then lane
    #      pad to the block-0 K pad and cast bf16 (one fused XLA pass).
    if s0 == 2:
        x_in = x.reshape(N, ho, 2, wo, 2, p0["cin"]).transpose(0, 1, 3, 2, 4, 5)
        x_in = x_in.reshape(N, ho, wo, 4 * p0["cin"])
    else:
        x_in = x
    cin0_pad = meta[0]["cin_pad"]
    x_in = jnp.pad(x_in, ((0, 0), (0, 0), (0, 0),
                          (0, cin0_pad - x_in.shape[-1]))).astype(jnp.bfloat16)

    # ---- VMEM plan / budget --------------------------------------------------
    hbuf = ho + 2
    wbuf = _round_up(wo + 4, 16)      # 2+1 halo cols; bf16 sublane packing
    scratch_bytes = 2 * hbuf * wbuf * cpad * 2                       # bf16
    io_bytes = 2 * (ho * wo * cin0_pad * 2) + 2 * (ho * wo * cofp * 4)
    wgt_bytes = sum(int(np.prod(a.shape)) * a.dtype.itemsize for a in wb_args)
    need = scratch_bytes + io_bytes + wgt_bytes
    try:
        cap = int(pltpu.get_tpu_info().vmem_capacity_bytes)
    except Exception:
        cap = 64 * 1024 * 1024        # v7x-safe fallback
    vmem_limit = min(int(cap * 3 // 4), max(2 * need, 32 * 1024 * 1024))
    assert need <= vmem_limit, (need, vmem_limit)

    kernel = _make_stage_kernel(meta, ho, wo, cpad)
    out = pl.pallas_call(
        kernel,
        out_shape=jax.ShapeDtypeStruct((N, ho, wo, cofp), jnp.float32),
        grid=(N,),
        in_specs=[pl.BlockSpec((1, ho, wo, cin0_pad),
                               lambda n: (n, 0, 0, 0))] + wb_specs,
        out_specs=pl.BlockSpec((1, ho, wo, cofp), lambda n: (n, 0, 0, 0)),
        scratch_shapes=[pltpu.VMEM((hbuf, wbuf, cpad), jnp.bfloat16),
                        pltpu.VMEM((hbuf, wbuf, cpad), jnp.bfloat16)],
        compiler_params=pltpu.CompilerParams(
            dimension_semantics=("parallel",),
            vmem_limit_bytes=vmem_limit),
    )(x_in, *wb_args)

    out = out[..., :cout_final]                 # drop lane padding
    return jnp.transpose(out, (0, 3, 1, 2))     # NHWC -> NCHW


# ----------------------------------------------------------------------------
# Pure-JAX reference (un-fused three-branch form, eval-mode BN)
# ----------------------------------------------------------------------------
def _ref_block(x_nhwc, p):
    s = p["stride"]

    def conv(x, w_oihw, pad):
        w_hwio = jnp.transpose(w_oihw, (2, 3, 1, 0))
        return jax.lax.conv_general_dilated(
            x, w_hwio, (s, s), [(pad, pad), (pad, pad)],
            dimension_numbers=("NHWC", "HWIO", "NHWC"))

    def bn(y, bnp):
        gamma, beta, mean, var = bnp
        return (y - mean) / jnp.sqrt(var + EPS) * gamma + beta

    out = bn(conv(x_nhwc, p["w3"], 1), p["bn3"])
    out = out + bn(conv(x_nhwc, p["w1"], 0), p["bn1"])
    if p["has_id"]:
        out = out + bn(x_nhwc, p["bnid"])
    return jnp.maximum(out, 0.0)


def stage_forward_ref(x_nchw, block_params):
    x = jnp.transpose(x_nchw, (0, 2, 3, 1))
    for p in block_params:
        x = _ref_block(x, p)
    return jnp.transpose(x, (0, 3, 1, 2))


# ----------------------------------------------------------------------------
if __name__ == "__main__":
    key = jax.random.PRNGKey(0)
    kx, kp = jax.random.split(key)

    # RepVGGplusStage(in_channels=4, out_channels=8, num_blocks=2, stride=2,
    #                 use_checkpoint=False, use_post_se=False, deploy=False)
    N, Cin, H, W = 2, 4, 16, 16
    Cout, num_blocks, stride = 8, 2, 2

    x = jax.random.normal(kx, (N, Cin, H, W), jnp.float32)
    params = make_stage_params(kp, Cin, Cout, num_blocks, stride)

    out = jax.block_until_ready(stage_forward(x, params))
    ref = jax.block_until_ready(stage_forward_ref(x, params))

    assert out.shape == (N, Cout, H // stride, W // stride), out.shape
    # bf16 MXU inputs / bf16 inter-block activations (f32 accumulation)
    # -> relaxed tolerance vs the f32 reference.
    assert np.allclose(np.asarray(out), np.asarray(ref), atol=1e-1, rtol=5e-2), (
        float(np.max(np.abs(np.asarray(out) - np.asarray(ref)))))
    print("KERNEL_OK")
</pallas_src>

<mosaic_0001>
module attributes {stable_mosaic.version = 11 : i64} {
  func.func @kernel(%arg0: i32, %arg1: memref<1x8x8x128xbf16, #tpu.memory_space<vmem>>, %arg2: memref<512x128xbf16, #tpu.memory_space<vmem>>, %arg3: memref<1x128xf32, #tpu.memory_space<vmem>>, %arg4: memref<1152x128xbf16, #tpu.memory_space<vmem>>, %arg5: memref<1x128xf32, #tpu.memory_space<vmem>>, %arg6: memref<1x8x8x128xf32, #tpu.memory_space<vmem>>, %arg7: memref<10x16x128xbf16, #tpu.memory_space<vmem>>, %arg8: memref<10x16x128xbf16, #tpu.memory_space<vmem>>) attributes {dimension_semantics = [#tpu.dimension_semantics<parallel>], iteration_bounds = array<i64: 2>, scalar_prefetch = 0 : i64, scratch_operands = 2 : i64, tpu.core_type = #tpu.core_type<tc>, window_params = [{transform_indices = @transform_0, window_bounds = array<i64: 1, 8, 8, 128>}, {pipeline_mode = #tpu.pipeline_mode<synchronous>, transform_indices = @transform_1, window_bounds = array<i64: 512, 128>}, {pipeline_mode = #tpu.pipeline_mode<synchronous>, transform_indices = @transform_2, window_bounds = array<i64: 1, 128>}, {pipeline_mode = #tpu.pipeline_mode<synchronous>, transform_indices = @transform_3, window_bounds = array<i64: 1152, 128>}, {pipeline_mode = #tpu.pipeline_mode<synchronous>, transform_indices = @transform_4, window_bounds = array<i64: 1, 128>}, {transform_indices = @transform_5, window_bounds = array<i64: 1, 8, 8, 128>}]} {
    %cst = arith.constant 0.000000e+00 : bf16
    %0 = vector.broadcast %cst : bf16 to vector<1x16x128xbf16>
    %cst_0 = arith.constant 0.000000e+00 : bf16
    %1 = vector.broadcast %cst_0 : bf16 to vector<10x2x128xbf16>
    %c0 = arith.constant 0 : index
    %c0_1 = arith.constant 0 : index
    %c0_2 = arith.constant 0 : index
    %2 = vector.load %arg7[%c0, %c0_1, %c0_2] : memref<10x16x128xbf16, #tpu.memory_space<vmem>>, vector<1x16x128xbf16>
    tpu.vector_store %arg7[%c0, %c0_1, %c0_2], %0 {strides = array<i32>} : memref<10x16x128xbf16, #tpu.memory_space<vmem>>, vector<1x16x128xbf16>,
    %c9 = arith.constant 9 : index
    %c0_3 = arith.constant 0 : index
    %c0_4 = arith.constant 0 : index
    %3 = vector.load %arg7[%c9, %c0_3, %c0_4] : memref<10x16x128xbf16, #tpu.memory_space<vmem>>, vector<1x16x128xbf16>
    tpu.vector_store %arg7[%c9, %c0_3, %c0_4], %0 {strides = array<i32>} : memref<10x16x128xbf16, #tpu.memory_space<vmem>>, vector<1x16x128xbf16>,
    %c0_5 = arith.constant 0 : index
    %c0_6 = arith.constant 0 : index
    %c0_7 = arith.constant 0 : index
    %4 = vector.load %arg7[%c0_5, %c0_6, %c0_7] : memref<10x16x128xbf16, #tpu.memory_space<vmem>>, vector<10x2x128xbf16>
    tpu.vector_store %arg7[%c0_5, %c0_6, %c0_7], %1 {strides = array<i32>} : memref<10x16x128xbf16, #tpu.memory_space<vmem>>, vector<10x2x128xbf16>,
    %c0_8 = arith.constant 0 : index
    %c10 = arith.constant 10 : index
    %c0_9 = arith.constant 0 : index
    %5 = vector.load %arg7[%c0_8, %c10, %c0_9] : memref<10x16x128xbf16, #tpu.memory_space<vmem>>, vector<10x2x128xbf16>
    tpu.vector_store %arg7[%c0_8, %c10, %c0_9], %1 {strides = array<i32>} : memref<10x16x128xbf16, #tpu.memory_space<vmem>>, vector<10x2x128xbf16>,
    %c0_10 = arith.constant 0 : index
    %c0_11 = arith.constant 0 : index
    %c0_12 = arith.constant 0 : index
    %6 = vector.load %arg8[%c0_10, %c0_11, %c0_12] : memref<10x16x128xbf16, #tpu.memory_space<vmem>>, vector<1x16x128xbf16>
    tpu.vector_store %arg8[%c0_10, %c0_11, %c0_12], %0 {strides = array<i32>} : memref<10x16x128xbf16, #tpu.memory_space<vmem>>, vector<1x16x128xbf16>,
    %c9_13 = arith.constant 9 : index
    %c0_14 = arith.constant 0 : index
    %c0_15 = arith.constant 0 : index
    %7 = vector.load %arg8[%c9_13, %c0_14, %c0_15] : memref<10x16x128xbf16, #tpu.memory_space<vmem>>, vector<1x16x128xbf16>
    tpu.vector_store %arg8[%c9_13, %c0_14, %c0_15], %0 {strides = array<i32>} : memref<10x16x128xbf16, #tpu.memory_space<vmem>>, vector<1x16x128xbf16>,
    %c0_16 = arith.constant 0 : index
    %c0_17 = arith.constant 0 : index
    %c0_18 = arith.constant 0 : index
    %8 = vector.load %arg8[%c0_16, %c0_17, %c0_18] : memref<10x16x128xbf16, #tpu.memory_space<vmem>>, vector<10x2x128xbf16>
    tpu.vector_store %arg8[%c0_16, %c0_17, %c0_18], %1 {strides = array<i32>} : memref<10x16x128xbf16, #tpu.memory_space<vmem>>, vector<10x2x128xbf16>,
    %c0_19 = arith.constant 0 : index
    %c10_20 = arith.constant 10 : index
    %c0_21 = arith.constant 0 : index
    %9 = vector.load %arg8[%c0_19, %c10_20, %c0_21] : memref<10x16x128xbf16, #tpu.memory_space<vmem>>, vector<10x2x128xbf16>
    tpu.vector_store %arg8[%c0_19, %c10_20, %c0_21], %1 {strides = array<i32>} : memref<10x16x128xbf16, #tpu.memory_space<vmem>>, vector<10x2x128xbf16>,
    %c0_22 = arith.constant 0 : index
    %c0_23 = arith.constant 0 : index
    %c0_24 = arith.constant 0 : index
    %c0_25 = arith.constant 0 : index
    %10 = vector.load %arg1[%c0_22, %c0_23, %c0_24, %c0_25] : memref<1x8x8x128xbf16, #tpu.memory_space<vmem>>, vector<1x8x8x128xbf16>
    %11 = vector.shape_cast %10 : vector<1x8x8x128xbf16> to vector<8x8x128xbf16>
    %c1 = arith.constant 1 : index
    %c2 = arith.constant 2 : index
    %c0_26 = arith.constant 0 : index
    %12 = vector.load %arg7[%c1, %c2, %c0_26] : memref<10x16x128xbf16, #tpu.memory_space<vmem>>, vector<8x8x128xbf16>
    tpu.vector_store %arg7[%c1, %c2, %c0_26], %11 {strides = array<i32>} : memref<10x16x128xbf16, #tpu.memory_space<vmem>>, vector<8x8x128xbf16>,
    %c0_27 = arith.constant 0 : index
    %c1_28 = arith.constant 1 : index
    %c0_29 = arith.constant 0 : index
    %13 = vector.load %arg7[%c0_27, %c1_28, %c0_29] : memref<10x16x128xbf16, #tpu.memory_space<vmem>>, vector<8x8x128xbf16>
    %14 = vector.shape_cast %13 : vector<8x8x128xbf16> to vector<64x128xbf16>
    %c0_30 = arith.constant 0 : index
    %c0_31 = arith.constant 0 : index
    %15 = vector.load %arg2[%c0_30, %c0_31] : memref<512x128xbf16, #tpu.memory_space<vmem>>, vector<128x128xbf16>
    %cst_32 = arith.constant dense<0.000000e+00> : vector<64x128xf32>
    %16 = tpu.matmul %14, %15, %cst_32 {dimension_numbers = #tpu.dot_dimension_numbers<[1], [0], [0], [1], [0, 0, 1, 1], [], []>} : vector<64x128xbf16>, vector<128x128xbf16>, vector<64x128xf32> -> vector<64x128xf32>
    %c0_33 = arith.constant 0 : index
    %c2_34 = arith.constant 2 : index
    %c0_35 = arith.constant 0 : index
    %17 = vector.load %arg7[%c0_33, %c2_34, %c0_35] : memref<10x16x128xbf16, #tpu.memory_space<vmem>>, vector<8x8x128xbf16>
    %18 = vector.shape_cast %17 : vector<8x8x128xbf16> to vector<64x128xbf16>
    %c128 = arith.constant 128 : index
    %c0_36 = arith.constant 0 : index
    %19 = vector.load %arg2[%c128, %c0_36] : memref<512x128xbf16, #tpu.memory_space<vmem>>, vector<128x128xbf16>
    %cst_37 = arith.constant dense<0.000000e+00> : vector<64x128xf32>
    %20 = tpu.matmul %18, %19, %cst_37 {dimension_numbers = #tpu.dot_dimension_numbers<[1], [0], [0], [1], [0, 0, 1, 1], [], []>} : vector<64x128xbf16>, vector<128x128xbf16>, vector<64x128xf32> -> vector<64x128xf32>
    %21 = arith.addf %16, %20 : vector<64x128xf32>
    %c1_38 = arith.constant 1 : index
    %c1_39 = arith.constant 1 : index
    %c0_40 = arith.constant 0 : index
    %22 = vector.load %arg7[%c1_38, %c1_39, %c0_40] : memref<10x16x128xbf16, #tpu.memory_space<vmem>>, vector<8x8x128xbf16>
    %23 = vector.shape_cast %22 : vector<8x8x128xbf16> to vector<64x128xbf16>
    %c256 = arith.constant 256 : index
    %c0_41 = arith.constant 0 : index
    %24 = vector.load %arg2[%c256, %c0_41] : memref<512x128xbf16, #tpu.memory_space<vmem>>, vector<128x128xbf16>
    %cst_42 = arith.constant dense<0.000000e+00> : vector<64x128xf32>
    %25 = tpu.matmul %23, %24, %cst_42 {dimension_numbers = #tpu.dot_dimension_numbers<[1], [0], [0], [1], [0, 0, 1, 1], [], []>} : vector<64x128xbf16>, vector<128x128xbf16>, vector<64x128xf32> -> vector<64x128xf32>
    %26 = arith.addf %21, %25 : vector<64x128xf32>
    %c1_43 = arith.constant 1 : index
    %c2_44 = arith.constant 2 : index
    %c0_45 = arith.constant 0 : index
    %27 = vector.load %arg7[%c1_43, %c2_44, %c0_45] : memref<10x16x128xbf16, #tpu.memory_space<vmem>>, vector<8x8x128xbf16>
    %28 = vector.shape_cast %27 : vector<8x8x128xbf16> to vector<64x128xbf16>
    %c384 = arith.constant 384 : index
    %c0_46 = arith.constant 0 : index
    %29 = vector.load %arg2[%c384, %c0_46] : memref<512x128xbf16, #tpu.memory_space<vmem>>, vector<128x128xbf16>
    %cst_47 = arith.constant dense<0.000000e+00> : vector<64x128xf32>
    %30 = tpu.matmul %28, %29, %cst_47 {dimension_numbers = #tpu.dot_dimension_numbers<[1], [0], [0], [1], [0, 0, 1, 1], [], []>} : vector<64x128xbf16>, vector<128x128xbf16>, vector<64x128xf32> -> vector<64x128xf32>
    %31 = arith.addf %26, %30 : vector<64x128xf32>
    %c0_48 = arith.constant 0 : index
    %c0_49 = arith.constant 0 : index
    %32 = vector.load %arg3[%c0_48, %c0_49] : memref<1x128xf32, #tpu.memory_space<vmem>>, vector<1x128xf32>
    %33 = vector.broadcast %32 : vector<1x128xf32> to vector<64x128xf32>
    %34 = arith.addf %31, %33 : vector<64x128xf32>
    %cst_50 = arith.constant 0.000000e+00 : f32
    %35 = vector.broadcast %cst_50 : f32 to vector<64x128xf32>
    %36 = arith.maximumf %34, %35 : vector<64x128xf32>
    %37 = vector.shape_cast %36 : vector<64x128xf32> to vector<8x8x128xf32>
    %38 = arith.truncf %37 : vector<8x8x128xf32> to vector<8x8x128xbf16>
    %c1_51 = arith.constant 1 : index
    %c2_52 = arith.constant 2 : index
    %c0_53 = arith.constant 0 : index
    %39 = vector.load %arg8[%c1_51, %c2_52, %c0_53] : memref<10x16x128xbf16, #tpu.memory_space<vmem>>, vector<8x8x128xbf16>
    tpu.vector_store %arg8[%c1_51, %c2_52, %c0_53], %38 {strides = array<i32>} : memref<10x16x128xbf16, #tpu.memory_space<vmem>>, vector<8x8x128xbf16>,
    %c0_54 = arith.constant 0 : index
    %c1_55 = arith.constant 1 : index
    %c0_56 = arith.constant 0 : index
    %40 = vector.load %arg8[%c0_54, %c1_55, %c0_56] : memref<10x16x128xbf16, #tpu.memory_space<vmem>>, vector<8x8x128xbf16>
    %41 = vector.shape_cast %40 : vector<8x8x128xbf16> to vector<64x128xbf16>
    %c0_57 = arith.constant 0 : index
    %c0_58 = arith.constant 0 : index
    %42 = vector.load %arg4[%c0_57, %c0_58] : memref<1152x128xbf16, #tpu.memory_space<vmem>>, vector<128x128xbf16>
    %cst_59 = arith.constant dense<0.000000e+00> : vector<64x128xf32>
    %43 = tpu.matmul %41, %42, %cst_59 {dimension_numbers = #tpu.dot_dimension_numbers<[1], [0], [0], [1], [0, 0, 1, 1], [], []>} : vector<64x128xbf16>, vector<128x128xbf16>, vector<64x128xf32> -> vector<64x128xf32>
    %c0_60 = arith.constant 0 : index
    %c2_61 = arith.constant 2 : index
    %c0_62 = arith.constant 0 : index
    %44 = vector.load %arg8[%c0_60, %c2_61, %c0_62] : memref<10x16x128xbf16, #tpu.memory_space<vmem>>, vector<8x8x128xbf16>
    %45 = vector.shape_cast %44 : vector<8x8x128xbf16> to vector<64x128xbf16>
    %c128_63 = arith.constant 128 : index
    %c0_64 = arith.constant 0 : index
    %46 = vector.load %arg4[%c128_63, %c0_64] : memref<1152x128xbf16, #tpu.memory_space<vmem>>, vector<128x128xbf16>
    %cst_65 = arith.constant dense<0.000000e+00> : vector<64x128xf32>
    %47 = tpu.matmul %45, %46, %cst_65 {dimension_numbers = #tpu.dot_dimension_numbers<[1], [0], [0], [1], [0, 0, 1, 1], [], []>} : vector<64x128xbf16>, vector<128x128xbf16>, vector<64x128xf32> -> vector<64x128xf32>
    %48 = arith.addf %43, %47 : vector<64x128xf32>
    %c0_66 = arith.constant 0 : index
    %c3 = arith.constant 3 : index
    %c0_67 = arith.constant 0 : index
    %49 = vector.load %arg8[%c0_66, %c3, %c0_67] : memref<10x16x128xbf16, #tpu.memory_space<vmem>>, vector<8x8x128xbf16>
    %50 = vector.shape_cast %49 : vector<8x8x128xbf16> to vector<64x128xbf16>
    %c256_68 = arith.constant 256 : index
    %c0_69 = arith.constant 0 : index
    %51 = vector.load %arg4[%c256_68, %c0_69] : memref<1152x128xbf16, #tpu.memory_space<vmem>>, vector<128x128xbf16>
    %cst_70 = arith.constant dense<0.000000e+00> : vector<64x128xf32>
    %52 = tpu.matmul %50, %51, %cst_70 {dimension_numbers = #tpu.dot_dimension_numbers<[1], [0], [0], [1], [0, 0, 1, 1], [], []>} : vector<64x128xbf16>, vector<128x128xbf16>, vector<64x128xf32> -> vector<64x128xf32>
    %53 = arith.addf %48, %52 : vector<64x128xf32>
    %c1_71 = arith.constant 1 : index
    %c1_72 = arith.constant 1 : index
    %c0_73 = arith.constant 0 : index
    %54 = vector.load %arg8[%c1_71, %c1_72, %c0_73] : memref<10x16x128xbf16, #tpu.memory_space<vmem>>, vector<8x8x128xbf16>
    %55 = vector.shape_cast %54 : vector<8x8x128xbf16> to vector<64x128xbf16>
    %c384_74 = arith.constant 384 : index
    %c0_75 = arith.constant 0 : index
    %56 = vector.load %arg4[%c384_74, %c0_75] : memref<1152x128xbf16, #tpu.memory_space<vmem>>, vector<128x128xbf16>
    %cst_76 = arith.constant dense<0.000000e+00> : vector<64x128xf32>
    %57 = tpu.matmul %55, %56, %cst_76 {dimension_numbers = #tpu.dot_dimension_numbers<[1], [0], [0], [1], [0, 0, 1, 1], [], []>} : vector<64x128xbf16>, vector<128x128xbf16>, vector<64x128xf32> -> vector<64x128xf32>
    %58 = arith.addf %53, %57 : vector<64x128xf32>
    %c1_77 = arith.constant 1 : index
    %c2_78 = arith.constant 2 : index
    %c0_79 = arith.constant 0 : index
    %59 = vector.load %arg8[%c1_77, %c2_78, %c0_79] : memref<10x16x128xbf16, #tpu.memory_space<vmem>>, vector<8x8x128xbf16>
    %60 = vector.shape_cast %59 : vector<8x8x128xbf16> to vector<64x128xbf16>
    %c512 = arith.constant 512 : index
    %c0_80 = arith.constant 0 : index
    %61 = vector.load %arg4[%c512, %c0_80] : memref<1152x128xbf16, #tpu.memory_space<vmem>>, vector<128x128xbf16>
    %cst_81 = arith.constant dense<0.000000e+00> : vector<64x128xf32>
    %62 = tpu.matmul %60, %61, %cst_81 {dimension_numbers = #tpu.dot_dimension_numbers<[1], [0], [0], [1], [0, 0, 1, 1], [], []>} : vector<64x128xbf16>, vector<128x128xbf16>, vector<64x128xf32> -> vector<64x128xf32>
    %63 = arith.addf %58, %62 : vector<64x128xf32>
    %c1_82 = arith.constant 1 : index
    %c3_83 = arith.constant 3 : index
    %c0_84 = arith.constant 0 : index
    %64 = vector.load %arg8[%c1_82, %c3_83, %c0_84] : memref<10x16x128xbf16, #tpu.memory_space<vmem>>, vector<8x8x128xbf16>
    %65 = vector.shape_cast %64 : vector<8x8x128xbf16> to vector<64x128xbf16>
    %c640 = arith.constant 640 : index
    %c0_85 = arith.constant 0 : index
    %66 = vector.load %arg4[%c640, %c0_85] : memref<1152x128xbf16, #tpu.memory_space<vmem>>, vector<128x128xbf16>
    %cst_86 = arith.constant dense<0.000000e+00> : vector<64x128xf32>
    %67 = tpu.matmul %65, %66, %cst_86 {dimension_numbers = #tpu.dot_dimension_numbers<[1], [0], [0], [1], [0, 0, 1, 1], [], []>} : vector<64x128xbf16>, vector<128x128xbf16>, vector<64x128xf32> -> vector<64x128xf32>
    %68 = arith.addf %63, %67 : vector<64x128xf32>
    %c2_87 = arith.constant 2 : index
    %c1_88 = arith.constant 1 : index
    %c0_89 = arith.constant 0 : index
    %69 = vector.load %arg8[%c2_87, %c1_88, %c0_89] : memref<10x16x128xbf16, #tpu.memory_space<vmem>>, vector<8x8x128xbf16>
    %70 = vector.shape_cast %69 : vector<8x8x128xbf16> to vector<64x128xbf16>
    %c768 = arith.constant 768 : index
    %c0_90 = arith.constant 0 : index
    %71 = vector.load %arg4[%c768, %c0_90] : memref<1152x128xbf16, #tpu.memory_space<vmem>>, vector<128x128xbf16>
    %cst_91 = arith.constant dense<0.000000e+00> : vector<64x128xf32>
    %72 = tpu.matmul %70, %71, %cst_91 {dimension_numbers = #tpu.dot_dimension_numbers<[1], [0], [0], [1], [0, 0, 1, 1], [], []>} : vector<64x128xbf16>, vector<128x128xbf16>, vector<64x128xf32> -> vector<64x128xf32>
    %73 = arith.addf %68, %72 : vector<64x128xf32>
    %c2_92 = arith.constant 2 : index
    %c2_93 = arith.constant 2 : index
    %c0_94 = arith.constant 0 : index
    %74 = vector.load %arg8[%c2_92, %c2_93, %c0_94] : memref<10x16x128xbf16, #tpu.memory_space<vmem>>, vector<8x8x128xbf16>
    %75 = vector.shape_cast %74 : vector<8x8x128xbf16> to vector<64x128xbf16>
    %c896 = arith.constant 896 : index
    %c0_95 = arith.constant 0 : index
    %76 = vector.load %arg4[%c896, %c0_95] : memref<1152x128xbf16, #tpu.memory_space<vmem>>, vector<128x128xbf16>
    %cst_96 = arith.constant dense<0.000000e+00> : vector<64x128xf32>
    %77 = tpu.matmul %75, %76, %cst_96 {dimension_numbers = #tpu.dot_dimension_numbers<[1], [0], [0], [1], [0, 0, 1, 1], [], []>} : vector<64x128xbf16>, vector<128x128xbf16>, vector<64x128xf32> -> vector<64x128xf32>
    %78 = arith.addf %73, %77 : vector<64x128xf32>
    %c2_97 = arith.constant 2 : index
    %c3_98 = arith.constant 3 : index
    %c0_99 = arith.constant 0 : index
    %79 = vector.load %arg8[%c2_97, %c3_98, %c0_99] : memref<10x16x128xbf16, #tpu.memory_space<vmem>>, vector<8x8x128xbf16>
    %80 = vector.shape_cast %79 : vector<8x8x128xbf16> to vector<64x128xbf16>
    %c1024 = arith.constant 1024 : index
    %c0_100 = arith.constant 0 : index
    %81 = vector.load %arg4[%c1024, %c0_100] : memref<1152x128xbf16, #tpu.memory_space<vmem>>, vector<128x128xbf16>
    %cst_101 = arith.constant dense<0.000000e+00> : vector<64x128xf32>
    %82 = tpu.matmul %80, %81, %cst_101 {dimension_numbers = #tpu.dot_dimension_numbers<[1], [0], [0], [1], [0, 0, 1, 1], [], []>} : vector<64x128xbf16>, vector<128x128xbf16>, vector<64x128xf32> -> vector<64x128xf32>
    %83 = arith.addf %78, %82 : vector<64x128xf32>
    %c0_102 = arith.constant 0 : index
    %c0_103 = arith.constant 0 : index
    %84 = vector.load %arg5[%c0_102, %c0_103] : memref<1x128xf32, #tpu.memory_space<vmem>>, vector<1x128xf32>
    %85 = vector.broadcast %84 : vector<1x128xf32> to vector<64x128xf32>
    %86 = arith.addf %83, %85 : vector<64x128xf32>
    %cst_104 = arith.constant 0.000000e+00 : f32
    %87 = vector.broadcast %cst_104 : f32 to vector<64x128xf32>
    %88 = arith.maximumf %86, %87 : vector<64x128xf32>
    %89 = vector.shape_cast %88 : vector<64x128xf32> to vector<8x8x128xf32>
    %c0_105 = arith.constant 0 : index
    %c0_106 = arith.constant 0 : index
    %c0_107 = arith.constant 0 : index
    %c0_108 = arith.constant 0 : index
    %90 = vector.load %arg6[%c0_105, %c0_106, %c0_107, %c0_108] : memref<1x8x8x128xf32, #tpu.memory_space<vmem>>, vector<1x8x8x128xf32>
    %91 = vector.shape_cast %90 : vector<1x8x8x128xf32> to vector<8x8x128xf32>
    %92 = vector.shape_cast %89 : vector<8x8x128xf32> to vector<1x8x8x128xf32>
    tpu.vector_store %arg6[%c0_105, %c0_106, %c0_107, %c0_108], %92 {strides = array<i32>} : memref<1x8x8x128xf32, #tpu.memory_space<vmem>>, vector<1x8x8x128xf32>,
    return
  }
  func.func @transform_0(%arg0: i32) -> (i32, i32, i32, i32) {
    %c0_i32 = arith.constant 0 : i32
    %c0_i32_0 = arith.constant 0 : i32
    %c0_i32_1 = arith.constant 0 : i32
    %c0_i32_2 = arith.constant 0 : i32
    return %arg0, %c0_i32, %c0_i32_0, %c0_i32_1 : i32, i32, i32, i32
  }
  func.func @transform_1(%arg0: i32) -> (i32, i32) {
    %c0_i32 = arith.constant 0 : i32
    %c0_i32_0 = arith.constant 0 : i32
    %c0_i32_1 = arith.constant 0 : i32
    return %c0_i32, %c0_i32_0 : i32, i32
  }
  func.func @transform_2(%arg0: i32) -> (i32, i32) {
    %c0_i32 = arith.constant 0 : i32
    %c0_i32_0 = arith.constant 0 : i32
    %c0_i32_1 = arith.constant 0 : i32
    return %c0_i32, %c0_i32_0 : i32, i32
  }
  func.func @transform_3(%arg0: i32) -> (i32, i32) {
    %c0_i32 = arith.constant 0 : i32
    %c0_i32_0 = arith.constant 0 : i32
    %c0_i32_1 = arith.constant 0 : i32
    return %c0_i32, %c0_i32_0 : i32, i32
  }
  func.func @transform_4(%arg0: i32) -> (i32, i32) {
    %c0_i32 = arith.constant 0 : i32
    %c0_i32_0 = arith.constant 0 : i32
    %c0_i32_1 = arith.constant 0 : i32
    return %c0_i32, %c0_i32_0 : i32, i32
  }
  func.func @transform_5(%arg0: i32) -> (i32, i32, i32, i32) {
    %c0_i32 = arith.constant 0 : i32
    %c0_i32_0 = arith.constant 0 : i32
    %c0_i32_1 = arith.constant 0 : i32
    %c0_i32_2 = arith.constant 0 : i32
    return %arg0, %c0_i32, %c0_i32_0, %c0_i32_1 : i32, i32, i32, i32
  }
}

</mosaic_0001>

<bundles_post_ra>
// kernel: tpu_custom_call.1
= control target key start
LH: loop header
LB: loop body
LE: loop exit
PB: predicated region body
PF: predicated region fallthrough
CT: control target
= control target key end

     0   :  { %10 = vsyncpa [#allocation5], 0  ;;  %s5035_s0 = inlined_call_operand.hbm [shape: bf16[2,8,8,128], index: 0, kind: input, shape index: {}]   ;;  %s5036_s1 = inlined_call_operand.hbm [shape: bf16[512,128], index: 1, kind: input, shape index: {}]   ;;  %s5037_s2 = inlined_call_operand.vmem [shape: f32[1,128], index: 2, kind: input, shape index: {}]   ;;  %s5038_s3 = inlined_call_operand.hbm [shape: bf16[1152,128], index: 3, kind: input, shape index: {}]   ;;  %s5039_s4 = inlined_call_operand.vmem [shape: f32[1,128], index: 4, kind: input, shape index: {}]   ;;  %s5040_s5 = inlined_call_operand.hbm [shape: f32[2,8,8,128], index: 5, kind: output, shape index: {}]  }
   0x1   :  { %12 = vsyncpa [#allocation5 + $0x1], 0 }
   0x2   :  { %13 = vsyncpa [#allocation8], 0 }
   0x3   :  { %14 = vsyncpa [#allocation6], 0 }
   0x4   :  { %16 = vsyncpa [#allocation6 + $0x1], 0  ;;  %s4359_s18 = smov 0   ;;  %s4361_s19 = smov 0  }
   0x5   :  { %s4363_s20 = smov 0   ;;  %s4365_s21 = smov 0  }
   0x6 LB: > { %s4380_s22 = sadd.s32 4294967295, %s4320_s21   ;;  %s3490_s23 = sadd.s32 4294967294, %s4320_s21   ;;  %s4320_s21 = sphi %s4365_s21, %s5058_s21   ;;  %s4316_s20 = sphi %s4363_s20, %s5057_s20   ;;  %s4312_s19 = sphi %s4361_s19, %s5056_s19   ;;  %s4308_s18 = sphi %s4359_s18, %s5055_s18  }
   0x7   : > { %p42_p0 = scmp.ne.s32.totalorder %s4312_s19, %s4308_s18  ;;  %p43_p1 = scmp.eq.s32.totalorder %s4380_s22, 0 }
   0x8   : > { %p150_p2 = scmp.eq.s32.totalorder %s4380_s22, 1  ;;  %p156_p3 = scmp.eq.s32.totalorder %s3490_s23, 1 }
   0x9   : > { %p4389_p4 = por %p43_p1, %p42_p0  ;;  %p3491_p5 = scmp.ge.s32.totalorder %s4320_s21, 1 }
   0xa   : > { %p4394_p6 = por %p156_p3, %p42_p0  ;;  %p163_p7 = scmp.lt.s32.totalorder %s4320_s21, 3 }
   0xb   : > { %s174_s28 = sshll.u32 %s5036_s1, 4  ;;  %s4322_s30 = smov [#allocation7]   ;;  %s175_s28 = int_to_ptr.hbm [resolvable:$true] %s174_s28 }
   0xc   : > { %p4402_p8 = pnand %p3491_p5, %p163_p7  ;;  %s176_s6 = sshll.u32 %s4322_s30, 4  ;;  %s177_s6 = int_to_ptr.vmem [resolvable:$true] %s176_s6 }
   0xd   : > { %s191_s9 = sshll.u32 %s5038_s3, 4  ;;  %s5041_s10 = smov 64   ;;  %s192_s9 = int_to_ptr.hbm [resolvable:$true] %s191_s9 }
   0xe   : > { %p4098_p9 = pneg %p4402_p8  ;;  %s4324_s11 = smov 4  }
   0xf   : > { %s4325_s12 = smov [#allocation9]   ;;  %s4421_s14 = sadd.s32 1, %s4320_s21  }
  0x10   : > { %p4099_p10 = pnand %p4098_p9, %p43_p1  ;;  %s193_s13 = sshll.u32 %s4325_s12, 4  ;;  %s194_s13 = int_to_ptr.vmem [resolvable:$true] %s193_s13 }
  0x11   : > { %s29_s15 = sadd.s32 1, %s4316_s20  ;;  %s26_s16 = ssub.s32 %s4320_s21, %s4421_s14 }
  0x12   : > { %4101 = dma.hbm_to_vmem [thread:$0]  (!%p4099_p10), %s175_s28, 4096, %s177_s6, [#allocation8], %s5041_s10, %s5041_s10, %s4324_s11  }
  0x13   : > { %4104 = dma.hbm_to_vmem [thread:$0]  (!%p4099_p10), %s192_s9, 9216, %s194_s13, [#allocation8], %s5041_s10, %s5041_s10, %s4324_s11  }
  0x14   : > { %p36_p12 = scmp.ne.s32.totalorder %s4316_s20, %s4312_s19  ;;  %p27_p13 = scmp.eq.s32.totalorder %s26_s16, 0 }
  0x15   : > { %p37_p0 = scmp.eq.s32.totalorder %s4320_s21, 0  ;;  %p4115_p5 = scmp.lt.s32.totalorder %s4320_s21, 2 }
  0x16   : > { %p4431_p3 = por %p150_p2, %p36_p12  ;;  %s210_s26 = sand.u32 1, %s4316_s20  }
  0x17   : > { %s4437_s23 = scalar_select %p27_p13, %s4316_s20, %s29_s15  }
  0x18   : > { %p38_p7 = por %p37_p0, %p36_p12  ;;  %s3495_s27 = sshll.u32 %s210_s26, 5 }
  0x19   : > { %s3964_s28 = sshll.u32 %s4320_s21, 5  ;;  %s214_s8 = scalar_lea.vmem [#allocation4], %s3495_s27 }
  0x1a   : > { %s219_s7 = scalar_lea.hbm %s5035_s0, %s3964_s28  ;;  %s222_s9 = sshll.u32 %s214_s8, 4  ;;  %s223_s9 = int_to_ptr.vmem [resolvable:$true] %s222_s9 }
  0x1b   : > { %s220_s12 = sshll.u32 %s219_s7, 4  ;;  %p4444_p2 = pnand %p4115_p5, %p38_p7  ;;  %s221_s12 = int_to_ptr.hbm [resolvable:$true] %s220_s12 }
  0x1c   : > { %s211_s15 = scalar_lea.sflag [#allocation5], %s210_s26  ;;  %s4220_s16 = sshra.s32 %s221_s12, 4  ;;  %s4221_s16 = int_to_ptr.hbm [resolvable:$true] %s4220_s16 }
  0x1d   : > { %s4222_s10 = scalar_lea.hbm %s4221_s16, 32  ;;  %p4224_p10 = pneg %p4444_p2 }
  0x1e   : > { %p4223_p9 = scmp.ne.s32.totalorder %s4221_s16, %s4222_s10  ;;  %s4227_s30 = scalar_lea.hbm %s5035_s0, 64 }
  0x1f   : > { %p4228_p0 = scmp.lt.s32.totalorder %s4221_s16, %s5035_s0  ;;  %p4229_p5 = scmp.lt.s32.totalorder %s4227_s30, %s4222_s10 }
  0x20   : > { %p4225_p12 = pnand %p4224_p10, %p4223_p9 }
  0x21   : > { %p4230_p7 = por %p4229_p5, %p4228_p0 }
  0x22   : > { %p4226_p13 = pneg %p4225_p12 }
  0x24   : > { %p4231_p11 = pnand %p4230_p7, %p4226_p13 }
  0x26   : > { %4234 = shalt.err (!%p4231_p11)
}
  0x27   : > { %s5047_s26 = smov 64   ;;  %234 = sbr.rel (%p4402_p8) target bundleno = 624 (0x270), region = 40 }
  0x28   : > { %4108 = dma.hbm_to_vmem [thread:$0]  (!%p4444_p2), %s221_s12, 512, %s223_s9, %s211_s15, %s5047_s26, %s5047_s26, %s4324_s11  }
  0x29   : > { %s4464_s8 = sand.u32 (!%p4402_p8), 1, %s4312_s19  }
  0x2a   : > { %s3499_s16 = sshll.u32 (!%p4402_p8), %s4464_s8, 5  ;;  %s237_s10 = scalar_lea.sflag (!%p4402_p8), [#allocation5], %s4464_s8 }
  0x2b   : > { %s4468_s28 = scalar_lea.vmem (!%p4402_p8), [#allocation4], %s3499_s16 }
  0x2c   : > { %4295 = dma.done.wait (%p4389_p4), %s237_s10, 512  }
  0x2d   : > { %4297 = vsyncadd (%p4389_p4), %s237_s10, 4294966784 }
  0x2e   : > { %4299 = dma.done.wait (%p43_p1), [#allocation8], 13312  }
  0x2f   : > { %4301 = vsyncadd (%p43_p1), [#allocation8], 4294953984  ;;  %v3980_v0 = vld [vmem:[#allocation7 + $0x78] sm:$0xff]  ;;  %v3979_v1 = vld [vmem:[#allocation7 + $0x70] sm:$0xff]  ;;  %v4326_v6 = vmov 0   ;;  %vm565_vm0 = vcmask 1042432  }
  0x30   : > { %4070 = vmatpush.bf16.msra.mxu1 %v3980_v0  ;;  %v3988_v2 = vld [vmem:[#allocation7 + $0xb8] sm:$0xff]  ;;  %680 = vmatpush.bf16.msra.mxu0 %v3980_v0  ;;  %v3987_v4 = vld [vmem:[#allocation7 + $0xb0] sm:$0xff]  ;;  %279 = vst [vmem:[#allocation2] sm:$0xf] %v4326_v6  ;;  %v3978_v7 = vld [vmem:[#allocation7 + $0x68] sm:$0xff]  ;;  %vm566_vm1 = vcmask 1046532  }
  0x31   : > { %v3996_v3 = vld [vmem:[#allocation7 + $0xf8] sm:$0xff]  ;;  %1010 = vmatpush.bf16.msra.mxu2 %v3988_v2  ;;  %v3995_v5 = vld [vmem:[#allocation7 + $0xf0] sm:$0xff]  ;;  %280 = vst [vmem:[#allocation2 + $0x4] sm:$0xf] %v4326_v6  ;;  %v3986_v8 = vld [vmem:[#allocation7 + $0xa8] sm:$0xff]  ;;  %s3502_s12 = sshll.u32 %s4464_s8, 6 }
  0x32   : > { %1183 = vmatpush.bf16.msra.mxu3 %v3996_v3  ;;  %285 = vst [vmem:[#allocation2 + $0x8] sm:$0x1] %v4326_v6  ;;  %v3994_v9 = vld [vmem:[#allocation7 + $0xe8] sm:$0xff]  ;;  %v3977_v10 = vld [vmem:[#allocation7 + $0x60] sm:$0xff]  ;;  %v3976_v11 = vld [vmem:[#allocation7 + $0x58] sm:$0xff]  ;;  %s4969_s13 = scalar_lea.vmem [#allocation10], %s3502_s12 }
  0x33   : > { %286 = vst [vmem:[#allocation2 + $0x10] sm:$0x1] %v4326_v6  ;;  %v3975_v12 = vld [vmem:[#allocation7 + $0x50] sm:$0xff]  ;;  %v3974_v13 = vld [vmem:[#allocation7 + $0x48] sm:$0xff]  ;;  %v3973_v14 = vld [vmem:[#allocation7 + $0x40] sm:$0xff]  ;;  %s4069_s15 = sshll.u32 %s4380_s22, 6 }
  0x34   : > { %4071 = vmatpush.bf16.msra.mxu1 %v3979_v1  ;;  %681 = vmatpush.bf16.msra.mxu0 %v3979_v1  ;;  %287 = vst [vmem:[#allocation2 + $0x18] sm:$0x1] %v4326_v6  ;;  %v3972_v15 = vld [vmem:[#allocation7 + $0x38] sm:$0xff]  ;;  %v3985_v16 = vld [vmem:[#allocation7 + $0xa0] sm:$0xff]  ;;  %v3971_v20 = vld [vmem:[#allocation7 + $0x30] sm:$0xff]  ;;  %s3394_s6 = scalar_lea.hbm %s5040_s5, %s4069_s15  ;;  %s3395_s7 = sshll.u32 %s4969_s13, 4  ;;  %s3396_s7 = int_to_ptr.vmem [resolvable:$true] %s3395_s7 }
  0x35   : > { %1011 = vmatpush.bf16.msra.mxu2 %v3987_v4  ;;  %288 = vst [vmem:[#allocation2 + $0x20] sm:$0x1] %v4326_v6  ;;  %v3993_v17 = vld [vmem:[#allocation7 + $0xe0] sm:$0xff]  ;;  %v3984_v18 = vld [vmem:[#allocation7 + $0x98] sm:$0xff]  ;;  %v332_v21 = vld [vmem:[%s4468_s28 + $0xc] sm:$0xf] }
  0x36   : > { %1184 = vmatpush.bf16.msra.mxu3 %v3995_v5  ;;  %289 = vst [vmem:[#allocation2 + $0x28] sm:$0x1] %v4326_v6  ;;  %v3992_v19 = vld [vmem:[#allocation7 + $0xd8] sm:$0xff]  ;;  %v333_v22 = vld [vmem:[%s4468_s28 + $0x10] sm:$0xf]  ;;  %v351_v25 = vrot.slane %v332_v21, 7  ;;  %vm4524_vm2 = vmor %vm565_vm0, %vm566_vm1 }
  0x37   : > { %290 = vst [vmem:[#allocation2 + $0x30] sm:$0x1] %v4326_v6  ;;  %v3983_v23 = vld [vmem:[#allocation7 + $0x90] sm:$0xff]  ;;  %v3970_v26 = vld [vmem:[#allocation7 + $0x28] sm:$0xff]  ;;  %v353_v28 = vrot.slane %v333_v22, 7  ;;  %v3969_v34 = vld [vmem:[#allocation7 + $0x20] sm:$0xff] }
  0x38   : > { %4072 = vmatpush.bf16.msra.mxu1 %v3978_v7  ;;  %682 = vmatpush.bf16.msra.mxu0 %v3978_v7  ;;  %291 = vst [vmem:[#allocation2 + $0x38] sm:$0x1] %v4326_v6  ;;  %v3991_v24 = vld [vmem:[#allocation7 + $0xd0] sm:$0xff]  ;;  %v3982_v29 = vld [vmem:[#allocation7 + $0x88] sm:$0xff]  ;;  %v335_v30 = vld [vmem:[%s4468_s28 + $0x18] sm:$0xf] }
  0x39   : > { %1012 = vmatpush.bf16.msra.mxu2 %v3986_v8  ;;  %292 = vst [vmem:[#allocation2 + $0x40] sm:$0x1] %v4326_v6  ;;  %v334_v27 = vld [vmem:[%s4468_s28 + $0x14] sm:$0xf]  ;;  %v3990_v31 = vld [vmem:[#allocation7 + $0xc8] sm:$0xff]  ;;  %v352_v33 = vrot.slane %v351_v25, 4 }
  0x3a   : > { %1185 = vmatpush.bf16.msra.mxu3 %v3994_v9  ;;  %304 = vst [vmem:[#allocation3] sm:$0xf] %v4326_v6  ;;  %v355_v32 = vrot.slane %v334_v27, 7  ;;  %v354_v35 = vrot.slane %v353_v28, 4  ;;  %v357_v36 = vrot.slane %v335_v30, 7  ;;  %v3968_v40 = vld [vmem:[#allocation7 + $0x18] sm:$0xff] }
  0x3b   : > { %305 = vst [vmem:[#allocation3 + $0x4] sm:$0xf] %v4326_v6  ;;  %v329_v37 = vld [vmem:[%s4468_s28] sm:$0xf]  ;;  %v330_v38 = vld [vmem:[%s4468_s28 + $0x4] sm:$0xf] }
  0x3c   : > { %4073 = vmatpush.bf16.msra.mxu1 %v3977_v10  ;;  %683 = vmatpush.bf16.msra.mxu0 %v3977_v10  ;;  %307 = vst [vmem:[#allocation3 + $0x48] sm:$0xf] %v4326_v6  ;;  %v356_v39 = vrot.slane %v355_v32, 4  ;;  %v3981_v41 = vld [vmem:[#allocation7 + $0x80] sm:$0xff]  ;;  %v331_v42 = vld [vmem:[%s4468_s28 + $0x8] sm:$0xf] }
  0x3d   : > { %308 = vst [vmem:[#allocation3 + $0x4c] sm:$0xf] %v4326_v6  ;;  %1013 = vmatpush.bf16.msra.mxu2 %v3985_v16  ;;  %v3989_v43 = vld [vmem:[#allocation7 + $0xc0] sm:$0xff]  ;;  %v345_v44 = vrot.slane %v329_v37, 7  ;;  %v347_v45 = vrot.slane %v330_v38, 7  ;;  %v358_v46 = vrot.slane %v357_v36, 4 }
  0x3e   : > { %310 = vst [vmem:[#allocation3 + $0x8] sm:$0x1] %v4326_v6  ;;  %1186 = vmatpush.bf16.msra.mxu3 %v3993_v17  ;;  %v395_v47 = vld [vmem:[#allocation2 + $0x4] sm:$0x1]  ;;  %v3967_v48 = vld [vmem:[#allocation7 + $0x10] sm:$0xff]  ;;  %v349_v51 = vrot.slane %v331_v42, 7 }
  0x3f   : > { %311 = vst [vmem:[#allocation3 + $0x10] sm:$0x1] %v4326_v6  ;;  %v346_v49 = vrot.slane %v345_v44, 4  ;;  %v348_v50 = vrot.slane %v347_v45, 4  ;;  %v541_v52 = vld [vmem:[#allocation2] sm:$0xe] }
  0x40   : > { %4074 = vmatpush.bf16.msra.mxu1 %v3976_v11  ;;  %684 = vmatpush.bf16.msra.mxu0 %v3976_v11  ;;  %312 = vst [vmem:[#allocation3 + $0x18] sm:$0x1] %v4326_v6  ;;  %v423_v54 = vshll.u32 %v395_v47, 16  ;;  %v570_v55 = vrot.slane %v395_v47, 5  ;;  %v3966_v59 = vld [vmem:[#allocation7 + $0x8] sm:$0xff]  ;;  %v350_v60 = vrot.slane %v349_v51, 4 }
  0x41   : > { %313 = vst [vmem:[#allocation3 + $0x20] sm:$0x1] %v4326_v6  ;;  %1014 = vmatpush.bf16.msra.mxu2 %v3984_v18  ;;  %vm410_vm3 = vsmask.f32 3328  ;;  %vm411_vm4 = vsmask.f32 7440 }
  0x42   : > { %314 = vst [vmem:[#allocation3 + $0x28] sm:$0x1] %v4326_v6  ;;  %1187 = vmatpush.bf16.msra.mxu3 %v3992_v19  ;;  %v3965_v17 = vld [vmem:[#allocation7] sm:$0xff]  ;;  %v4545_v22 = vrot.slane %v423_v54, 5  ;;  %vm4560_vm5 = vmor %vm410_vm3, %vm411_vm4  ;;  %vm1715_vm6 = vsmask.f32 2304 }
  0x43   : > { %315 = vst [vmem:[#allocation3 + $0x30] sm:$0x1] %v4326_v6  ;;  %vm1716_vm7 = vsmask.f32 6416  ;;  %s3397_s26 = sshll.u32 %s3394_s6, 4  ;;  %s3383_s22 = scalar_lea.sflag [#allocation6], %s4464_s8  ;;  %s3398_s26 = int_to_ptr.hbm [resolvable:$true] %s3397_s26 }
  0x44   : > { %4075 = vmatpush.bf16.msra.mxu1 %v3975_v12  ;;  %685 = vmatpush.bf16.msra.mxu0 %v3975_v12  ;;  %316 = vst [vmem:[#allocation3 + $0x38] sm:$0x1] %v4326_v6  ;;  %vm4655_vm8 = vmor %vm1715_vm6, %vm1716_vm7  ;;  %s4264_s16 = sshra.s32 %s3398_s26, 4  ;;  %s4270_s29 = scalar_lea.hbm %s5040_s5, 128  ;;  %s4265_s16 = int_to_ptr.hbm [resolvable:$true] %s4264_s16 }
  0x45   : > { %317 = vst [vmem:[#allocation3 + $0x40] sm:$0x1] %v4326_v6  ;;  %1015 = vmatpush.bf16.msra.mxu2 %v3983_v23  ;;  %s4266_s10 = scalar_lea.hbm %s4265_s16, 64  ;;  %p4271_p11 = scmp.lt.s32.totalorder %s4265_s16, %s5040_s5 }
  0x46   : > { %320 = vst [vmem:[#allocation3 + $0xc] sm:$0x2] %v4326_v6  ;;  %1188 = vmatpush.bf16.msra.mxu3 %v3991_v24  ;;  %p4267_p1 = scmp.ne.s32.totalorder %s4265_s16, %s4266_s10  ;;  %p4272_p2 = scmp.lt.s32.totalorder %s4270_s29, %s4266_s10 }
  0x47   : > { %321 = vst [vmem:[#allocation3 + $0x14] sm:$0x2] %v4326_v6 }
  0x48   : > { %4076 = vmatpush.bf16.msra.mxu1 %v3974_v13  ;;  %686 = vmatpush.bf16.msra.mxu0 %v3974_v13  ;;  %322 = vst [vmem:[#allocation3 + $0x1c] sm:$0x2] %v4326_v6  ;;  %p4268_p4 = pnand %p4267_p1, %p4431_p3  ;;  %p4273_p9 = por %p4272_p2, %p4271_p11 }
  0x49   : > { %323 = vst [vmem:[#allocation3 + $0x24] sm:$0x2] %v4326_v6  ;;  %1016 = vmatpush.bf16.msra.mxu2 %v3982_v29 }
  0x4a   : > { %324 = vst [vmem:[#allocation3 + $0x2c] sm:$0x2] %v4326_v6  ;;  %1189 = vmatpush.bf16.msra.mxu3 %v3990_v31  ;;  %p4269_p8 = pneg %p4268_p4 }
  0x4b   : > { %325 = vst [vmem:[#allocation3 + $0x34] sm:$0x2] %v4326_v6 }
  0x4c   : > { %4077 = vmatpush.bf16.msra.mxu1 %v3973_v14  ;;  %687 = vmatpush.bf16.msra.mxu0 %v3973_v14  ;;  %326 = vst [vmem:[#allocation3 + $0x3c] sm:$0x2] %v4326_v6  ;;  %p4274_p10 = pnand %p4273_p9, %p4269_p8 }
  0x4d   : > { %327 = vst [vmem:[#allocation3 + $0x44] sm:$0x2] %v4326_v6  ;;  %1017 = vmatpush.bf16.msra.mxu2 %v3981_v41 }
  0x4e   : > { %284 = vst [vmem:[#allocation2] sm:$0x1] %v4326_v6  ;;  %1190 = vmatpush.bf16.msra.mxu3 %v3989_v43 }
  0x4f   : > { %309 = vst [vmem:[#allocation3] sm:$0x1] %v4326_v6 }
  0x50   : > { %773 = vmatpush.bf16.msrb.mxu1 %v3972_v15  ;;  %318 = vst [vmem:[#allocation3 + $0x48] sm:$0x1] %v4326_v6 }
  0x51   : > { %319 = vst [vmem:[#allocation3 + $0x4] sm:$0x2] %v4326_v6 }
  0x52   : > { %328 = vst [vmem:[#allocation3 + $0x4c] sm:$0x2] %v4326_v6  ;;  %v3503_v6 = vrot.slane %v541_v52, 9 }
  0x53   : > { %384 = vst [vmem:[#allocation2 + $0x20] sm:$0xe] %v351_v25 }
  0x54   : > { %774 = vmatpush.bf16.msrb.mxu1 %v3971_v20  ;;  %385 = vst [vmem:[#allocation2 + $0x24] sm:$0x1] %v352_v33  ;;  %v4543_v21 = vsel %vm4524_vm2, %v3503_v6, %v570_v55 }
  0x55   : > { %386 = vst [vmem:[#allocation2 + $0x28] sm:$0xe] %v353_v28  ;;  %v394_v53 = vld [vmem:[#allocation2] sm:$0xf]  ;;  %v616_v38 = vunpack.c.l.b16 %v4543_v21 }
  0x56   : > { %387 = vst [vmem:[#allocation2 + $0x2c] sm:$0x1] %v354_v35  ;;  %v414_v56 = vshrl.u32 %v394_v53, 16  ;;  %v417_v57 = vshll.u32 %v394_v53, 16 }
  0x57   : > { %388 = vst [vmem:[#allocation2 + $0x30] sm:$0xe] %v355_v32 }
  0x58   : > { %775 = vmatpush.bf16.msrb.mxu1 %v3970_v26  ;;  %389 = vst [vmem:[#allocation2 + $0x34] sm:$0x1] %v356_v39  ;;  %v416_v0 = vrot.slane %v414_v56, 4  ;;  %v419_v3 = vrot.slane %v417_v57, 5 }
  0x59   : > { %390 = vst [vmem:[#allocation2 + $0x38] sm:$0xe] %v357_v36 }
  0x5a   : > { %v545_v58 = vld [vmem:[#allocation2 + $0x20] sm:$0xe]  ;;  %391 = vst [vmem:[#allocation2 + $0x3c] sm:$0x1] %v358_v46  ;;  %v420_v10 = vor.u32 %v419_v3, %v416_v0 }
  0x5b   : > { %v4520_v61 = vld [vmem:[#allocation2 + $0x24] sm:$0x1]  ;;  %v3507_v63 = vrot.slane %v545_v58, 9  ;;  %378 = vst [vmem:[#allocation2 + $0x8] sm:$0xe] %v345_v44 }
  0x5c   : > { %776 = vmatpush.bf16.msrb.mxu1 %v3969_v34  ;;  %v546_v1 = vld [vmem:[#allocation2 + $0x28] sm:$0xe]  ;;  %v586_v2 = vrot.slane %v4520_v61, 5  ;;  %379 = vst [vmem:[#allocation2 + $0xc] sm:$0x1] %v346_v49  ;;  %v4552_v28 = vrot.slane %v420_v10, 4 }
  0x5d   : > { %v4529_v4 = vld [vmem:[#allocation2 + $0x2c] sm:$0x1]  ;;  %v3508_v5 = vrot.slane %v546_v1, 9  ;;  %380 = vst [vmem:[#allocation2 + $0x10] sm:$0xe] %v347_v45 }
  0x5e   : > { %v587_v7 = vsel %vm4524_vm2, %v3507_v63, %v586_v2  ;;  %v590_v8 = vrot.slane %v4529_v4, 5  ;;  %v547_v9 = vld [vmem:[#allocation2 + $0x30] sm:$0xe]  ;;  %381 = vst [vmem:[#allocation2 + $0x14] sm:$0x1] %v348_v50 }
  0x5f   : > { %v620_v11 = vunpack.c.l.b16 %v587_v7  ;;  %v4534_v12 = vld [vmem:[#allocation2 + $0x34] sm:$0x1]  ;;  %v3509_v13 = vrot.slane %v547_v9, 9  ;;  %382 = vst [vmem:[#allocation2 + $0x18] sm:$0xe] %v349_v51 }
  0x60   : > { %777 = vmatpush.bf16.msrb.mxu1 %v3968_v40  ;;  %v591_v14 = vsel %vm4524_vm2, %v3508_v5, %v590_v8  ;;  %v548_v15 = vld [vmem:[#allocation2 + $0x38] sm:$0xe]  ;;  %v594_v16 = vrot.slane %v4534_v12, 5  ;;  %383 = vst [vmem:[#allocation2 + $0x1c] sm:$0x1] %v350_v60 }
  0x61   : > { %v621_v18 = vunpack.c.l.b16 %v591_v14  ;;  %v4539_v19 = vld [vmem:[#allocation2 + $0x3c] sm:$0x1]  ;;  %v3510_v20 = vrot.slane %v548_v15, 9  ;;  %v4547_v23 = vld [vmem:[#allocation2 + $0x20] sm:$0xf] }
  0x62   : > { %v595_v24 = vsel %vm4524_vm2, %v3509_v13, %v594_v16  ;;  %v598_v25 = vrot.slane %v4539_v19, 5  ;;  %v802_v26 = vld [vmem:[#allocation2 + $0x8] sm:$0xf]  ;;  %v861_v33 = vshrl.u32 %v4547_v23, 16 }
  0x63   : > { %v1047_v27 = vld [vmem:[#allocation2 + $0x8] sm:$0xe]  ;;  %v626_v29 = vpack.c.b16 %v621_v18, %v620_v11  ;;  %v803_v30 = vld [vmem:[#allocation2 + $0xc] sm:$0x1]  ;;  %v819_v31 = vshrl.u32 %v802_v26, 16  ;;  %v822_v32 = vshll.u32 %v802_v26, 16  ;;  %v622_v45 = vunpack.c.l.b16 %v595_v24 }
  0x64   : > { %778 = vmatpush.bf16.msrb.mxu1 %v3967_v48  ;;  %v804_v34 = vld [vmem:[#allocation2 + $0x10] sm:$0xf]  ;;  %v828_v35 = vshll.u32 %v803_v30, 16  ;;  %v3607_v37 = vrot.slane %v1047_v27, 9  ;;  %v599_v39 = vsel %vm4524_vm2, %v3510_v20, %v598_v25  ;;  %v397_v44 = vld [vmem:[#allocation2 + $0xc] sm:$0x1] }
  0x65   : > { %v1048_v36 = vld [vmem:[#allocation2 + $0x10] sm:$0xe]  ;;  %698 = vmatmul.bf16.vlgmr.msra.gmra.mxu1 %v626_v29  ;;  %v805_v40 = vld [vmem:[#allocation2 + $0x14] sm:$0x1]  ;;  %v821_v41 = vrot.slane %v819_v31, 4  ;;  %v824_v42 = vrot.slane %v822_v32, 5  ;;  %v623_v55 = vunpack.c.l.b16 %v599_v39 }
  0x66   : > { %v833_v43 = vshrl.u32 %v804_v34, 16  ;;  %v836_v46 = vshll.u32 %v804_v34, 16  ;;  %v842_v47 = vshll.u32 %v805_v40, 16  ;;  %v1073_v48 = vrot.slane %v803_v30, 5  ;;  %v542_v49 = vld [vmem:[#allocation2 + $0x8] sm:$0xe] }
  0x67   : > { %v825_v50 = vor.u32 %v824_v42, %v821_v41  ;;  %v830_v51 = vrot.slane %v828_v35, 5  ;;  %v3608_v53 = vrot.slane %v1048_v36, 9  ;;  %v396_v54 = vld [vmem:[#allocation2 + $0x8] sm:$0xf]  ;;  %v3504_v1 = vrot.slane %v542_v49, 9 }
  0x68   : > { %779 = vmatpush.bf16.msrb.mxu1 %v3966_v59  ;;  %v835_v52 = vrot.slane %v833_v43, 4  ;;  %v838_v57 = vrot.slane %v836_v46, 5  ;;  %v1074_v58 = vsel %vm4524_vm2, %v3607_v37, %v1073_v48  ;;  %v1077_v59 = vrot.slane %v805_v40, 5  ;;  %v806_v7 = vld [vmem:[#allocation2 + $0x18] sm:$0xf] }
  0x69   : > { %v826_v60 = vrot.slane %v825_v50, 4  ;;  %v844_v63 = vrot.slane %v842_v47, 5  ;;  %v1119_v0 = vunpack.c.l.b16 %v1074_v58  ;;  %v574_v5 = vrot.slane %v397_v44, 5  ;;  %v807_v13 = vld [vmem:[#allocation2 + $0x1c] sm:$0x1] }
  0x6a   : > { %v839_v2 = vor.u32 %v838_v57, %v835_v52  ;;  %v1078_v3 = vsel %vm4524_vm2, %v3608_v53, %v1077_v59  ;;  %v428_v6 = vshrl.u32 %v396_v54, 16  ;;  %v437_v10 = vshll.u32 %v397_v44, 16  ;;  %v809_v24 = vld [vmem:[#allocation2 + $0x24] sm:$0x1]  ;;  %v1049_v31 = vld [vmem:[#allocation2 + $0x18] sm:$0xe] }
  0x6b   : > { %v831_v8 = vsel %vm4560_vm5, %v826_v60, %v830_v51  ;;  %v1120_v9 = vunpack.c.l.b16 %v1078_v3  ;;  %v431_v11 = vshll.u32 %v396_v54, 16  ;;  %v575_v16 = vsel %vm4524_vm2, %v3504_v1, %v574_v5  ;;  %v1050_v37 = vld [vmem:[#allocation2 + $0x20] sm:$0xe]  ;;  %v543_v43 = vld [vmem:[#allocation2 + $0x10] sm:$0xe] }
  0x6c   : > { %780 = vmatpush.bf16.msrb.mxu1 %v3965_v17  ;;  %v840_v14 = vrot.slane %v839_v2, 4  ;;  %v946_v15 = vunpack.c.l.b16 %v831_v8  ;;  %v430_v17 = vrot.slane %v428_v6, 4  ;;  %v617_v20 = vunpack.c.l.b16 %v575_v16  ;;  %v4575_v48 = vld [vmem:[#allocation2 + $0x14] sm:$0x1]  ;;  %v4581_v51 = vld [vmem:[#allocation2 + $0x1c] sm:$0x1] }
  0x6d   : > { %v1127_v18 = vpack.c.b16 %v1120_v9, %v1119_v0  ;;  %v433_v21 = vrot.slane %v431_v11, 5  ;;  %v847_v25 = vshrl.u32 %v806_v7, 16  ;;  %v627_v26 = vpack.c.b16 %v623_v55, %v622_v45  ;;  %v400_v9 = vld [vmem:[#allocation2 + $0x18] sm:$0xf] }
  0x6e   : > { %v845_v27 = vsel %vm4560_vm5, %v840_v14, %v844_v63  ;;  %v850_v29 = vshll.u32 %v806_v7, 16  ;;  %v856_v30 = vshll.u32 %v807_v13, 16  ;;  %v624_v34 = vpack.c.b16 %v617_v20, %v616_v38  ;;  %v398_v63 = vld [vmem:[#allocation2 + $0x10] sm:$0xf]  ;;  %v810_v14 = vld [vmem:[#allocation2 + $0x28] sm:$0xf] }
  0x6f   : > { %v947_v32 = vunpack.c.l.b16 %v845_v27  ;;  %1191 = vmatmul.bf16.vlgmr.msra.gmra.mxu3 %v1127_v18  ;;  %v849_v35 = vrot.slane %v847_v25, 4  ;;  %v863_v36 = vrot.slane %v861_v33, 4  ;;  %v434_v39 = vor.u32 %v433_v21, %v430_v17 }
  0x70   : > { %v852_v40 = vrot.slane %v850_v29, 5  ;;  %v864_v41 = vshll.u32 %v4547_v23, 16  ;;  %v870_v42 = vshll.u32 %v809_v24, 16  ;;  %688 = vmatmul.bf16.vlgmr.msra.gmra.mxu0 %v624_v34  ;;  %v439_v45 = vrot.slane %v437_v10, 5  ;;  %v544_v23 = vld [vmem:[#allocation2 + $0x18] sm:$0xe] }
  0x71   : > { %v954_v44 = vpack.c.b16 %v947_v32, %v946_v15  ;;  %v3609_v46 = vrot.slane %v1049_v31, 9  ;;  %v1081_v47 = vrot.slane %v807_v13, 5  ;;  %v426_v38 = vsel %vm4560_vm5, %v4552_v28, %v4545_v22  ;;  %v811_v31 = vld [vmem:[#allocation2 + $0x2c] sm:$0x1] }
  0x72   : > { %v853_v33 = vor.u32 %v852_v40, %v849_v35  ;;  %v866_v49 = vrot.slane %v864_v41, 5  ;;  %v3610_v50 = vrot.slane %v1050_v37, 9  ;;  %v858_v52 = vrot.slane %v856_v30, 5  ;;  %v813_v37 = vld [vmem:[#allocation2 + $0x34] sm:$0x1] }
  0x73   : > { %1018 = vmatmul.bf16.vlgmr.msra.gmra.mxu2 %v954_v44  ;;  %v1082_v53 = vsel %vm4524_vm2, %v3609_v46, %v1081_v47  ;;  %v1085_v54 = vrot.slane %v809_v24, 5  ;;  %v3505_v55 = vrot.slane %v543_v43, 9  ;;  %v435_v57 = vrot.slane %v434_v39, 4  ;;  %v1051_v44 = vld [vmem:[#allocation2 + $0x28] sm:$0xe] }
  0x74   : > { %v854_v58 = vrot.slane %v853_v33, 4  ;;  %v867_v59 = vor.u32 %v866_v49, %v863_v36  ;;  %v872_v60 = vrot.slane %v870_v42, 5  ;;  %v578_v28 = vrot.slane %v4575_v48, 5  ;;  %v1052_v33 = vld [vmem:[#allocation2 + $0x30] sm:$0xe] }
  0x75   : > { %703 = vmatmul.bf16.gmra.mxu1 %v627_v26  ;;  %v1086_v22 = vsel %vm4524_vm2, %v3610_v50, %v1085_v54  ;;  %v3506_v0 = vrot.slane %v544_v23, 9  ;;  %v582_v1 = vrot.slane %v4581_v51, 5  ;;  %v1121_v3 = vunpack.c.l.b16 %v1082_v53  ;;  %v812_v26 = vld [vmem:[#allocation2 + $0x30] sm:$0xf] }
  0x76   : > { %v868_v2 = vrot.slane %v867_v59, 4  ;;  %v1122_v5 = vunpack.c.l.b16 %v1086_v22  ;;  %v859_v6 = vsel %vm4560_vm5, %v854_v58, %v858_v52  ;;  %v579_v7 = vsel %vm4524_vm2, %v3505_v55, %v578_v28 }
  0x77   : > { %v583_v8 = vsel %vm4524_vm2, %v3506_v0, %v582_v1  ;;  %v442_v10 = vshrl.u32 %v398_v63, 16  ;;  %v709_v11 = vunpack.c.l.b16 %v426_v38  ;;  %v440_v15 = vsel %vm4560_vm5, %v435_v57, %v439_v45 }
  0x78   : > { %v873_v13 = vsel %vm4560_vm5, %v868_v2, %v872_v60  ;;  %v618_v16 = vunpack.c.l.b16 %v579_v7  ;;  %v619_v17 = vunpack.c.l.b16 %v583_v8  ;;  %v445_v18 = vshll.u32 %v398_v63, 16  ;;  %v336_v8 = vld [vmem:[%s4468_s28 + $0x1c] sm:$0xf] }
  0x79   : > { %v948_v20 = vunpack.c.l.b16 %v859_v6  ;;  %v1128_v21 = vpack.c.b16 %v1122_v5, %v1121_v3  ;;  %v456_v24 = vshrl.u32 %v400_v9, 16  ;;  %v459_v25 = vshll.u32 %v400_v9, 16  ;;  %v814_v9 = vld [vmem:[#allocation2 + $0x38] sm:$0xf] }
  0x7a   : > { %v949_v27 = vunpack.c.l.b16 %v873_v13  ;;  %v444_v29 = vrot.slane %v442_v10, 4  ;;  %v447_v30 = vrot.slane %v445_v18, 5  ;;  %v875_v32 = vshrl.u32 %v810_v14, 16  ;;  %v404_v13 = vld [vmem:[#allocation2 + $0x28] sm:$0xf] }
  0x7b   : > { %v710_v34 = vunpack.c.l.b16 %v440_v15  ;;  %v458_v35 = vrot.slane %v456_v24, 4  ;;  %v461_v36 = vrot.slane %v459_v25, 5  ;;  %v878_v39 = vshll.u32 %v810_v14, 16 }
  0x7c   : > { %v625_v40 = vpack.c.b16 %v619_v17, %v618_v16  ;;  %v451_v41 = vshll.u32 %v4575_v48, 16  ;;  %v877_v42 = vrot.slane %v875_v32, 4  ;;  %v889_v43 = vshrl.u32 %v812_v26, 16 }
  0x7d   : > { %v465_v45 = vshll.u32 %v4581_v51, 16  ;;  %v880_v46 = vrot.slane %v878_v39, 5  ;;  %v884_v47 = vshll.u32 %v811_v31, 16  ;;  %v892_v38 = vshll.u32 %v812_v26, 16  ;;  %v1053_v39 = vld [vmem:[#allocation2 + $0x38] sm:$0xe] }
  0x7e   : > { %v955_v49 = vpack.c.b16 %v949_v27, %v948_v20  ;;  %v448_v50 = vor.u32 %v447_v30, %v444_v29  ;;  %v891_v23 = vrot.slane %v889_v43, 4  ;;  %v898_v52 = vshll.u32 %v813_v37, 16 }
  0x7f   : > { %1196 = vmatmul.bf16.gmra.mxu3 %v1128_v21  ;;  %v462_v53 = vor.u32 %v461_v36, %v458_v35  ;;  %v881_v54 = vor.u32 %v880_v46, %v877_v42  ;;  %v894_v55 = vrot.slane %v892_v38, 5  ;;  %v3611_v57 = vrot.slane %v1051_v44, 9  ;;  %v815_v35 = vld [vmem:[#allocation2 + $0x3c] sm:$0x1] }
  0x80   : > { %v717_v58 = vpack.c.b16 %v710_v34, %v709_v11  ;;  %693 = vmatmul.bf16.gmra.mxu0 %v625_v40  ;;  %v1089_v48 = vrot.slane %v811_v31, 5  ;;  %v3612_v59 = vrot.slane %v1052_v33, 9  ;;  %v1093_v60 = vrot.slane %v813_v37, 5  ;;  %v402_v11 = vld [vmem:[#allocation2 + $0x20] sm:$0xf] }
  0x81   : > { %v882_v51 = vrot.slane %v881_v54, 4  ;;  %v886_v63 = vrot.slane %v884_v47, 5  ;;  %v895_v22 = vor.u32 %v894_v55, %v891_v23  ;;  %v449_v28 = vrot.slane %v448_v50, 4 }
  0x82   : > { %v453_v0 = vrot.slane %v451_v41, 5  ;;  %v467_v1 = vrot.slane %v465_v45, 5  ;;  %v900_v2 = vrot.slane %v898_v52, 5  ;;  %v463_v3 = vrot.slane %v462_v53, 4 }
  0x83   : > { %1023 = vmatmul.bf16.gmra.mxu2 %v955_v49  ;;  %v896_v5 = vrot.slane %v895_v22, 4  ;;  %v1090_v6 = vsel %vm4524_vm2, %v3611_v57, %v1089_v48  ;;  %v1094_v7 = vsel %vm4524_vm2, %v3612_v59, %v1093_v60  ;;  %v887_v10 = vsel %vm4560_vm5, %v882_v51, %v886_v63 }
  0x84   : > { %v1123_v15 = vunpack.c.l.b16 %v1090_v6  ;;  %v1124_v16 = vunpack.c.l.b16 %v1094_v7  ;;  %v454_v17 = vsel %vm4560_vm5, %v449_v28, %v453_v0  ;;  %v468_v18 = vsel %vm4560_vm5, %v463_v3, %v467_v1 }
  0x85   : > { %781 = vmatmul.bf16.vlgmr.msrb.gmra.mxu1 %v717_v58  ;;  %v901_v14 = vsel %vm4560_vm5, %v896_v5, %v900_v2  ;;  %v359_v20 = vrot.slane %v336_v8, 7  ;;  %v903_v21 = vshrl.u32 %v814_v9, 16  ;;  %v950_v24 = vunpack.c.l.b16 %v887_v10 }
  0x86   : > { %v470_v25 = vshrl.u32 %v402_v11, 16  ;;  %v473_v26 = vshll.u32 %v402_v11, 16  ;;  %v484_v27 = vshrl.u32 %v404_v13, 16  ;;  %v951_v29 = vunpack.c.l.b16 %v901_v14 }
  0x87   : > { %v487_v30 = vshll.u32 %v404_v13, 16  ;;  %v360_v31 = vrot.slane %v359_v20, 4  ;;  %392 = vst [vmem:[#allocation2 + $0x40] sm:$0xe] %v359_v20  ;;  %v906_v32 = vshll.u32 %v814_v9, 16  ;;  %v1129_v34 = vpack.c.b16 %v1124_v16, %v1123_v15 }
  0x88   : > { %v905_v36 = vrot.slane %v903_v21, 4  ;;  %v711_v40 = vunpack.c.l.b16 %v454_v17  ;;  %v712_v41 = vunpack.c.l.b16 %v468_v18  ;;  %v472_v42 = vrot.slane %v470_v25, 4  ;;  %v406_v9 = vld [vmem:[#allocation2 + $0x30] sm:$0xf]  ;;  %v408_v13 = vld [vmem:[#allocation2 + $0x38] sm:$0xf] }
  0x89   : > { %393 = vst [vmem:[#allocation2 + $0x44] sm:$0x1] %v360_v31  ;;  %v908_v37 = vrot.slane %v906_v32, 5  ;;  %v475_v43 = vrot.slane %v473_v26, 5  ;;  %v956_v44 = vpack.c.b16 %v951_v29, %v950_v24  ;;  %v486_v45 = vrot.slane %v484_v27, 4 }
  0x8a   : > { %v489_v46 = vrot.slane %v487_v30, 5  ;;  %v912_v38 = vshll.u32 %v815_v35, 16  ;;  %v3613_v33 = vrot.slane %v1053_v39, 9  ;;  %v1097_v49 = vrot.slane %v815_v35, 5 }
  0x8b   : > { %v909_v47 = vor.u32 %v908_v37, %v905_v36  ;;  %v718_v50 = vpack.c.b16 %v712_v41, %v711_v40  ;;  %v476_v23 = vor.u32 %v475_v43, %v472_v42  ;;  %v479_v52 = vshll.u32 %v4520_v61, 16 }
  0x8c   : > { %v493_v53 = vshll.u32 %v4529_v4, 16  ;;  %v490_v57 = vor.u32 %v489_v46, %v486_v45  ;;  %v914_v51 = vrot.slane %v912_v38, 5  ;;  %v1098_v63 = vsel %vm4524_vm2, %v3613_v33, %v1097_v49 }
  0x8d   : > { %v910_v60 = vrot.slane %v909_v47, 4  ;;  %v477_v61 = vrot.slane %v476_v23, 4  ;;  %v481_v4 = vrot.slane %v479_v52, 5  ;;  %v1125_v10 = vunpack.c.l.b16 %v1098_v63  ;;  %v4012_v52 = vld [vmem:[#allocation9 + $0x78] sm:$0xff]  ;;  %v4002_v63 = vld [vmem:[#allocation9 + $0x28] sm:$0xff] }
  0x8e   : > { %v816_v54 = vld [vmem:[#allocation2 + $0x40] sm:$0xf]  ;;  %v495_v3 = vrot.slane %v493_v53, 5  ;;  %v491_v5 = vrot.slane %v490_v57, 4  ;;  %v498_v17 = vshrl.u32 %v406_v9, 16  ;;  %v501_v18 = vshll.u32 %v406_v9, 16  ;;  %1585 = vmatpush.bf16.msrb.mxu0 %v4012_v52 }
  0x8f   : > { %1201 = vmatmul.bf16.gmra.mxu3 %v1129_v34  ;;  %v1054_v55 = vld [vmem:[#allocation2 + $0x40] sm:$0xe]  ;;  %v917_v58 = vshrl.u32 %v816_v54, 16  ;;  %v920_v48 = vshll.u32 %v816_v54, 16  ;;  %v915_v14 = vsel %vm4560_vm5, %v910_v60, %v914_v51  ;;  %v482_v16 = vsel %vm4560_vm5, %v477_v61, %v481_v4  ;;  %v4011_v53 = vld [vmem:[#allocation9 + $0x70] sm:$0xff]  ;;  %v4004_v54 = vld [vmem:[#allocation9 + $0x38] sm:$0xff] }
  0x90   : > { %v817_v59 = vld [vmem:[#allocation2 + $0x44] sm:$0x1]  ;;  %v3614_v22 = vrot.slane %v1054_v55, 9  ;;  %v496_v20 = vsel %vm4560_vm5, %v491_v5, %v495_v3  ;;  %v512_v24 = vshrl.u32 %v408_v13, 16  ;;  %v515_v25 = vshll.u32 %v408_v13, 16  ;;  %1678 = vmatpush.bf16.msra.mxu1 %v4004_v54  ;;  %v4019_v55 = vld [vmem:[#allocation9 + $0xb0] sm:$0xff] }
  0x91   : > { %v919_v28 = vrot.slane %v917_v58, 4  ;;  %v922_v0 = vrot.slane %v920_v48, 5  ;;  %v926_v1 = vshll.u32 %v817_v59, 16  ;;  %v1101_v2 = vrot.slane %v817_v59, 5  ;;  %v4010_v57 = vld [vmem:[#allocation9 + $0x68] sm:$0xff]  ;;  %v4003_v58 = vld [vmem:[#allocation9 + $0x30] sm:$0xff] }
  0x92   : > { %v952_v26 = vunpack.c.l.b16 %v915_v14  ;;  %v713_v30 = vunpack.c.l.b16 %v482_v16  ;;  %v714_v31 = vunpack.c.l.b16 %v496_v20  ;;  %v500_v32 = vrot.slane %v498_v17, 4  ;;  %1586 = vmatpush.bf16.msrb.mxu0 %v4011_v53  ;;  %v4028_v59 = vld [vmem:[#allocation9 + $0xf8] sm:$0xff]  ;;  %v4018_v60 = vld [vmem:[#allocation9 + $0xa8] sm:$0xff]  ;;  %v4009_v51 = vld [vmem:[#allocation9 + $0x60] sm:$0xff] }
  0x93   : > { %1028 = vmatmul.bf16.gmra.mxu2 %v956_v44  ;;  %v923_v6 = vor.u32 %v922_v0, %v919_v28  ;;  %v928_v7 = vrot.slane %v926_v1, 5  ;;  %v1102_v8 = vsel %vm4524_vm2, %v3614_v22, %v1101_v2  ;;  %v503_v34 = vrot.slane %v501_v18, 5  ;;  %2187 = vmatpush.bf16.msrb.mxu3 %v4028_v59  ;;  %v4008_v22 = vld [vmem:[#allocation9 + $0x58] sm:$0xff]  ;;  %v4027_v28 = vld [vmem:[#allocation9 + $0xf0] sm:$0xff]  ;;  %v4001_v0 = vld [vmem:[#allocation9 + $0x20] sm:$0xff] }
  0x94   : > { %v1126_v11 = vunpack.c.l.b16 %v1102_v8  ;;  %v514_v35 = vrot.slane %v512_v24, 4  ;;  %v517_v36 = vrot.slane %v515_v25, 5  ;;  %v719_v39 = vpack.c.b16 %v714_v31, %v713_v30  ;;  %1679 = vmatpush.bf16.msra.mxu1 %v4003_v58  ;;  %v4017_v2 = vld [vmem:[#allocation9 + $0xa0] sm:$0xff]  ;;  %v4007_v61 = vld [vmem:[#allocation9 + $0x50] sm:$0xff]  ;;  %v4000_v4 = vld [vmem:[#allocation9 + $0x18] sm:$0xff] }
  0x95   : > { %786 = vmatmul.bf16.gmra.mxu1 %v718_v50  ;;  %v924_v15 = vrot.slane %v923_v6, 4  ;;  %v504_v40 = vor.u32 %v503_v34, %v500_v32  ;;  %v507_v41 = vshll.u32 %v4534_v12, 16  ;;  %v521_v43 = vshll.u32 %v4539_v19, 16  ;;  %v4020_v12 = vld [vmem:[#allocation9 + $0xb8] sm:$0xff]  ;;  %v4026_v6 = vld [vmem:[#allocation9 + $0xe8] sm:$0xff]  ;;  %v3999_v9 = vld [vmem:[#allocation9 + $0x10] sm:$0xff] }
  0x96   : > { %v1130_v29 = vpack.c.b16 %v1126_v11, %v1125_v10  ;;  %v518_v42 = vor.u32 %v517_v36, %v514_v35  ;;  %1942 = vmatpush.bf16.msrb.mxu2 %v4020_v12  ;;  %1587 = vmatpush.bf16.msrb.mxu0 %v4010_v57  ;;  %v4016_v3 = vld [vmem:[#allocation9 + $0x98] sm:$0xff]  ;;  %v4006_v8 = vld [vmem:[#allocation9 + $0x48] sm:$0xff]  ;;  %v4015_v10 = vld [vmem:[#allocation9 + $0x90] sm:$0xff] }
  0x97   : > { %v929_v21 = vsel %vm4560_vm5, %v924_v15, %v928_v7  ;;  %v505_v44 = vrot.slane %v504_v40, 4  ;;  %v509_v45 = vrot.slane %v507_v41, 5  ;;  %v523_v47 = vrot.slane %v521_v43, 5  ;;  %2188 = vmatpush.bf16.msrb.mxu3 %v4027_v28  ;;  %v4025_v13 = vld [vmem:[#allocation9 + $0xe0] sm:$0xff]  ;;  %v3998_v16 = vld [vmem:[#allocation9 + $0x8] sm:$0xff]  ;;  %v4024_v18 = vld [vmem:[#allocation9 + $0xd8] sm:$0xff] }
  0x98   : > { %v953_v27 = vunpack.c.l.b16 %v929_v21  ;;  %v519_v46 = vrot.slane %v518_v42, 4  ;;  %1680 = vmatpush.bf16.msra.mxu1 %v4002_v63  ;;  %v4005_v15 = vld [vmem:[#allocation9 + $0x40] sm:$0xff]  ;;  %v4014_v17 = vld [vmem:[#allocation9 + $0x88] sm:$0xff]  ;;  %v4023_v25 = vld [vmem:[#allocation9 + $0xd0] sm:$0xff] }
  0x99   : > { %v510_v38 = vsel %vm4560_vm5, %v505_v44, %v509_v45  ;;  %v3997_v21 = vld [vmem:[#allocation9] sm:$0xff]  ;;  %v4642_v30 = vld [vmem:[#allocation3] sm:$0xe]  ;;  %v1707_v42 = vld [vmem:[#allocation3 + $0x4] sm:$0x3] }
  0x9a   : > { %v957_v37 = vpack.c.b16 %v953_v27, %v952_v26  ;;  %v524_v33 = vsel %vm4560_vm5, %v519_v46, %v523_v47  ;;  %v715_v49 = vunpack.c.l.b16 %v510_v38  ;;  %1943 = vmatpush.bf16.msrb.mxu2 %v4019_v55  ;;  %1588 = vmatpush.bf16.msrb.mxu0 %v4009_v51  ;;  %v4013_v24 = vld [vmem:[#allocation9 + $0x80] sm:$0xff]  ;;  %v1305_v31 = vld [vmem:[#allocation3] sm:$0xf]  ;;  %v1722_v40 = vshll.u32 %v4642_v30, 16  ;;  %v4022_v44 = vld [vmem:[#allocation9 + $0xc8] sm:$0xff] }
  0x9b   : > { %v716_v50 = vunpack.c.l.b16 %v524_v33  ;;  %2189 = vmatpush.bf16.msrb.mxu3 %v4026_v6  ;;  %v4647_v34 = vld [vmem:[%s5037_s2] ss:$0 sm:$0xff]  ;;  %v1322_v36 = vshrl.u32 %v1305_v31, 16  ;;  %v1728_v12 = vshrl.u32 %v1707_v42, 16  ;;  %v1731_v52 = vshll.u32 %v1707_v42, 16 }
  0x9c   : > { %1681 = vmatpush.bf16.msra.mxu1 %v4001_v0  ;;  %v1306_v57 = vld [vmem:[#allocation3 + $0x4] sm:$0x1]  ;;  %v4021_v58 = vld [vmem:[#allocation9 + $0xc0] sm:$0xff] }
  0x9d   : > { %v720_v23 = vpack.c.b16 %v716_v50, %v715_v49  ;;  %v1324_v47 = vrot.slane %v1322_v36, 4  ;;  %v1724_v49 = vrot.slane %v1722_v40, 6  ;;  %v1331_v59 = vshll.u32 %v1306_v57, 16 }
  0x9e   : > { %1944 = vmatpush.bf16.msrb.mxu2 %v4018_v60  ;;  %1589 = vmatpush.bf16.msrb.mxu0 %v4008_v22  ;;  %v1730_v28 = vrot.slane %v1728_v12, 5  ;;  %v1733_v0 = vrot.slane %v1731_v52, 6 }
  0x9f   : > { %1206 = vmatmul.bf16.gmra.mxu3 %v1130_v29 }
  0xa0   : > { %1682 = vmatpush.bf16.msra.mxu1 %v4000_v4  ;;  %2190 = vmatpush.bf16.msrb.mxu3 %v4025_v13  ;;  %v4036_v13 = vld [vmem:[#allocation9 + $0x138] sm:$0xff] }
  0xa2   : > { %1945 = vmatpush.bf16.msrb.mxu2 %v4017_v2  ;;  %1590 = vmatpush.bf16.msrb.mxu0 %v4007_v61  ;;  %v3647_v61 = vrot.slane %v4642_v30, 9 }
  0xa3   : > { %1033 = vmatmul.bf16.gmra.mxu2 %v957_v37  ;;  %v1325_v37 = vshll.u32 %v1305_v31, 16 }
  0xa4   : > { %1683 = vmatpush.bf16.msra.mxu1 %v3999_v9  ;;  %2191 = vmatpush.bf16.msrb.mxu3 %v4024_v18 }
  0xa5   : > { %791 = vmatmul.bf16.gmra.mxu1 %v719_v39  ;;  %v1719_v39 = vshrl.u32 %v4642_v30, 16  ;;  %v1327_v38 = vrot.slane %v1325_v37, 5 }
  0xa6   : > { %1946 = vmatpush.bf16.msrb.mxu2 %v4016_v3  ;;  %1591 = vmatpush.bf16.msrb.mxu0 %v4006_v8 }
  0xa7   : > { %v1721_v33 = vrot.slane %v1719_v39, 5  ;;  %v1328_v60 = vor.u32 %v1327_v38, %v1324_v47 }
  0xa8   : > { %1684 = vmatpush.bf16.msra.mxu1 %v3998_v16  ;;  %2192 = vmatpush.bf16.msrb.mxu3 %v4023_v25 }
  0xa9   : > { %v1725_v51 = vor.u32 %v1724_v49, %v1721_v33  ;;  %v1329_v8 = vrot.slane %v1328_v60, 4 }
  0xaa   : > { %1947 = vmatpush.bf16.msrb.mxu2 %v4015_v10  ;;  %1592 = vmatpush.bf16.msrb.mxu0 %v4005_v15  ;;  %v1734_v15 = vor.u32 %v1733_v0, %v1730_v28 }
  0xac   : > { %1685 = vmatpush.bf16.msra.mxu1 %v3997_v21  ;;  %2193 = vmatpush.bf16.msrb.mxu3 %v4022_v44 }
  0xae   : > { %1948 = vmatpush.bf16.msrb.mxu2 %v4014_v17  ;;  %2360 = vmatpush.bf16.msra.mxu0 %v4036_v13 }
  0xb0   : > { %2194 = vmatpush.bf16.msrb.mxu3 %v4021_v58 }
  0xb2   : > { %1949 = vmatpush.bf16.msrb.mxu2 %v4013_v24 }
  0xb5   : > { %796 = vmatmul.bf16.gmra.mxu1 %v720_v23 }
  0xe2   : > { %v4634_v19 = vpop.f32.mrf.mxu1 }
  0xea   : > { %v4636_v48 = vpop.f32.mrf.mxu1 }
  0xed   : > { %v689_v14 = vpop.f32.mrf.mxu0 }
  0xf2   : > { %v4638_v1 = vpop.f32.mrf.mxu1  ;;  %v1192_v7 = vpop.f32.mrf.mxu3 }
  0xf5   : > { %v691_v35 = vpop.f32.mrf.mxu0 }
  0xf6   : > { %v1019_v5 = vpop.f32.mrf.mxu2 }
  0xfa   : > { %v4640_v11 = vpop.f32.mrf.mxu1  ;;  %v1194_v27 = vpop.f32.mrf.mxu3 }
  0xfd   : > { %v694_v2 = vpop.f32.mrf.mxu0 }
  0xfe   : > { %v1021_v20 = vpop.f32.mrf.mxu2 }
 0x102   : > { %v782_v26 = vpop.f32.mrf.mxu1  ;;  %v1197_v53 = vpop.f32.mrf.mxu3 }
 0x103   : > { %v783_v29 = vadd.f32 %v782_v26, %v689_v14  ;;  %v1726_v14 = vrot.slane %v1725_v51, 4 }
 0x105   : > { %v1039_v32 = vadd.f32 %v1019_v5, %v783_v29  ;;  %v1475_v5 = vrot.slane %v1306_v57, 5  ;;  %v4665_v29 = vsel %vm4655_vm8, %v1726_v14, %v1734_v15  ;;  %v696_v40 = vpop.f32.mrf.mxu0 }
 0x106   : > { %v1024_v46 = vpop.f32.mrf.mxu2  ;;  %v1878_v47 = vunpack.c.l.b16 %v4665_v29 }
 0x107   : > { %v1212_v41 = vadd.f32 %v1192_v7, %v1039_v32  ;;  %v1333_v7 = vrot.slane %v1331_v59, 5  ;;  %v1476_v21 = vsel %vm4524_vm2, %v3647_v61, %v1475_v5 }
 0x108   : > { %v1521_v31 = vunpack.c.l.b16 %v1476_v21 }
 0x109   : > { %v1224_v43 = vadd.f32 %v4647_v34, %v1212_v41 }
 0x10a   : > { %v784_v45 = vpop.f32.mrf.mxu1  ;;  %v1199_v24 = vpop.f32.mrf.mxu3 }
 0x10b   : > { %v1232_v50 = vmax.f32 %v1224_v43, 0.0  ;;  %v785_v23 = vadd.f32 %v784_v45, %v691_v35 }
 0x10d   : > { %v1240_v54 = vpack.c.bf16 %v1232_v50, %v1232_v50  ;;  %v1040_v55 = vadd.f32 %v1021_v20, %v785_v23  ;;  %v4035_v23 = vld [vmem:[#allocation9 + $0x130] sm:$0xff] }
 0x10e   : > { %v1026_v16 = vpop.f32.mrf.mxu2  ;;  %2361 = vmatpush.bf16.msra.mxu0 %v4035_v23 }
 0x10f   : > { %v1256_v63 = vrot.slane %v1240_v54, 7  ;;  %v1213_v22 = vadd.f32 %v1194_v27, %v1040_v55  ;;  %v1334_v27 = vsel %vm4560_vm5, %v1329_v8, %v1333_v7 }
 0x110   : > { %v4668_v44 = vunpack.c.l.b16 %v1334_v27 }
 0x111   : > { %v1257_v4 = vrot.slane %v1256_v63, 4  ;;  %1289 = vst [vmem:[#allocation3 + $0x8] sm:$0xe] %v1256_v63  ;;  %v1225_v3 = vadd.f32 %v4647_v34, %v1213_v22 }
 0x112   : > { %v787_v6 = vpop.f32.mrf.mxu1 }
 0x113   : > { %1290 = vst [vmem:[#allocation3 + $0xc] sm:$0x1] %v1257_v4  ;;  %v1233_v9 = vmax.f32 %v1225_v3, 0.0  ;;  %v788_v10 = vadd.f32 %v787_v6, %v694_v2  ;;  %v1202_v6 = vpop.f32.mrf.mxu3 }
 0x115   : > { %v1241_v18 = vpack.c.bf16 %v1233_v9, %v1233_v9  ;;  %v1041_v20 = vadd.f32 %v1024_v46, %v788_v10 }
 0x116   : > { %v1029_v51 = vpop.f32.mrf.mxu2 }
 0x117   : > { %v1258_v25 = vrot.slane %v1241_v18, 7  ;;  %v1214_v26 = vadd.f32 %v1197_v53, %v1041_v20 }
 0x118   : > { %v1450_v30 = vld [vmem:[#allocation3 + $0x8] sm:$0xe] }
 0x119   : > { %v1307_v32 = vld [vmem:[#allocation3 + $0x8] sm:$0xf]  ;;  %v1259_v35 = vrot.slane %v1258_v25, 4  ;;  %1291 = vst [vmem:[#allocation3 + $0x10] sm:$0xe] %v1258_v25  ;;  %v1226_v36 = vadd.f32 %v4647_v34, %v1214_v26  ;;  %v3648_v37 = vrot.slane %v1450_v30, 9 }
 0x11a   : > { %v1336_v39 = vshrl.u32 %v1307_v32, 16  ;;  %v789_v41 = vpop.f32.mrf.mxu1  ;;  %v1308_v42 = vld [vmem:[#allocation3 + $0xc] sm:$0x1]  ;;  %v1339_v43 = vshll.u32 %v1307_v32, 16  ;;  %v1737_v46 = vshrl.u32 %v1450_v30, 16  ;;  %v1740_v54 = vshll.u32 %v1450_v30, 16 }
 0x11b   : > { %v1708_v45 = vld [vmem:[#allocation3 + $0xc] sm:$0x3]  ;;  %1292 = vst [vmem:[#allocation3 + $0x14] sm:$0x1] %v1259_v35  ;;  %v1234_v38 = vmax.f32 %v1226_v36, 0.0  ;;  %v790_v33 = vadd.f32 %v789_v41, %v696_v40  ;;  %v1345_v49 = vshll.u32 %v1308_v42, 16 }
 0x11c   : > { %v1479_v50 = vrot.slane %v1308_v42, 5  ;;  %v1338_v12 = vrot.slane %v1336_v39, 4  ;;  %v1341_v52 = vrot.slane %v1339_v43, 5  ;;  %v1739_v53 = vrot.slane %v1737_v46, 5  ;;  %v1979_v55 = vld [vmem:[#allocation3 + $0x8] sm:$0xf] }
 0x11d   : > { %v1242_v57 = vpack.c.bf16 %v1234_v38, %v1234_v38  ;;  %v1042_v58 = vadd.f32 %v1026_v16, %v790_v33  ;;  %v1347_v59 = vrot.slane %v1345_v49, 5  ;;  %v1742_v28 = vrot.slane %v1740_v54, 6  ;;  %v4673_v3 = vld [vmem:[#allocation3 + $0xc] sm:$0x1]  ;;  %v4034_v35 = vld [vmem:[#allocation9 + $0x128] sm:$0xff] }
 0x11e   : > { %v1480_v60 = vsel %vm4524_vm2, %v3648_v37, %v1479_v50  ;;  %v1342_v22 = vor.u32 %v1341_v52, %v1338_v12  ;;  %v1746_v0 = vshrl.u32 %v1708_v45, 16  ;;  %v1749_v4 = vshll.u32 %v1708_v45, 16  ;;  %2362 = vmatpush.bf16.msra.mxu0 %v4034_v35  ;;  %v4051_v35 = vld [vmem:[#allocation9 + $0x1b0] sm:$0xff] }
 0x11f   : > { %v1522_v63 = vunpack.c.l.b16 %v1480_v60  ;;  %v1260_v2 = vrot.slane %v1242_v57, 7  ;;  %v1215_v61 = vadd.f32 %v1199_v24, %v1042_v58  ;;  %v1996_v5 = vshrl.u32 %v1979_v55, 16 }
 0x120   : > { %v1343_v8 = vrot.slane %v1342_v22, 4  ;;  %v1743_v9 = vor.u32 %v1742_v28, %v1739_v53  ;;  %v1748_v10 = vrot.slane %v1746_v0, 5  ;;  %v1981_v13 = vld [vmem:[#allocation3 + $0x10] sm:$0xf]  ;;  %v1751_v16 = vrot.slane %v1749_v4, 6 }
 0x121   : > { %v1529_v7 = vpack.c.b16 %v1522_v63, %v1521_v31  ;;  %v1261_v14 = vrot.slane %v1260_v2, 4  ;;  %1293 = vst [vmem:[#allocation3 + $0x18] sm:$0xe] %v1260_v2  ;;  %v1227_v15 = vadd.f32 %v4647_v34, %v1215_v61  ;;  %v1998_v18 = vrot.slane %v1996_v5, 4  ;;  %v4685_v50 = vld [vmem:[#allocation3 + $0x10] sm:$0xe]  ;;  %v1204_v2 = vpop.f32.mrf.mxu3 }
 0x122   : > { %v792_v20 = vpop.f32.mrf.mxu1  ;;  %v1348_v21 = vsel %vm4560_vm5, %v1343_v8, %v1347_v59  ;;  %v1744_v24 = vrot.slane %v1743_v9, 4  ;;  %v1999_v25 = vshll.u32 %v1979_v55, 16  ;;  %v2005_v26 = vshll.u32 %v4673_v3, 16  ;;  %v4680_v36 = vld [vmem:[#allocation3 + $0x14] sm:$0x1]  ;;  %v1031_v55 = vpop.f32.mrf.mxu2 }
 0x123   : > { %1593 = vmatmul.bf16.vlgmr.msrb.gmra.mxu0 %v1529_v7  ;;  %1294 = vst [vmem:[#allocation3 + $0x1c] sm:$0x1] %v1261_v14  ;;  %v1235_v27 = vmax.f32 %v1227_v15, 0.0  ;;  %v793_v30 = vadd.f32 %v792_v20, %v4634_v19  ;;  %v1615_v31 = vunpack.c.l.b16 %v1348_v21  ;;  %v1752_v32 = vor.u32 %v1751_v16, %v1748_v10  ;;  %v1310_v54 = vld [vmem:[#allocation3 + $0x14] sm:$0x1]  ;;  %v4052_v20 = vld [vmem:[#allocation9 + $0x1b8] sm:$0xff] }
 0x124   : > { %v2001_v37 = vrot.slane %v1999_v25, 5  ;;  %v2007_v39 = vrot.slane %v2005_v26, 5  ;;  %v2010_v40 = vshrl.u32 %v1981_v13, 16  ;;  %v2013_v41 = vshll.u32 %v1981_v13, 16  ;;  %2875 = vmatpush.bf16.msra.mxu2 %v4052_v20 }
 0x125   : > { %v1243_v42 = vpack.c.bf16 %v1235_v27, %v1235_v27  ;;  %v1043_v43 = vadd.f32 %v1029_v51, %v793_v30  ;;  %v1622_v45 = vpack.c.b16 %v1615_v31, %v4668_v44  ;;  %v1753_v46 = vsel %vm4655_vm8, %v1744_v24, %v1752_v32  ;;  %v1309_v51 = vld [vmem:[#allocation3 + $0x10] sm:$0xf] }
 0x126   : > { %v1879_v38 = vunpack.c.l.b16 %v1753_v46  ;;  %v2002_v33 = vor.u32 %v2001_v37, %v1998_v18  ;;  %v2012_v19 = vrot.slane %v2010_v40, 4  ;;  %v2015_v49 = vrot.slane %v2013_v41, 5  ;;  %v4033_v18 = vld [vmem:[#allocation9 + $0x120] sm:$0xff] }
 0x127   : > { %v1262_v23 = vrot.slane %v1243_v42, 7  ;;  %v1216_v12 = vadd.f32 %v1202_v6, %v1043_v43  ;;  %1686 = vmatmul.bf16.vlgmr.msra.gmra.mxu1 %v1622_v45  ;;  %v2019_v52 = vshll.u32 %v4680_v36, 16  ;;  %v2250_v53 = vrot.slane %v4673_v3, 5  ;;  %2363 = vmatpush.bf16.msra.mxu0 %v4033_v18  ;;  %v4032_v42 = vld [vmem:[#allocation9 + $0x118] sm:$0xff] }
 0x128   : > { %v1886_v44 = vpack.c.b16 %v1879_v38, %v1878_v47  ;;  %v2003_v57 = vrot.slane %v2002_v33, 4  ;;  %v2016_v58 = vor.u32 %v2015_v49, %v2012_v19  ;;  %v2254_v59 = vrot.slane %v4680_v36, 5  ;;  %v4692_v60 = vld [vmem:[#allocation3 + $0x18] sm:$0xe]  ;;  %v1709_v33 = vld [vmem:[#allocation3 + $0x14] sm:$0x3]  ;;  %2876 = vmatpush.bf16.msra.mxu2 %v4051_v35 }
 0x129   : > { %v1263_v63 = vrot.slane %v1262_v23, 4  ;;  %1295 = vst [vmem:[#allocation3 + $0x20] sm:$0xe] %v1262_v23  ;;  %v1228_v22 = vadd.f32 %v4647_v34, %v1216_v12  ;;  %v2021_v28 = vrot.slane %v2019_v52, 5  ;;  %v3649_v0 = vrot.slane %v4685_v50, 9 }
 0x12a   : > { %1950 = vmatmul.bf16.vlgmr.msrb.gmra.mxu2 %v1886_v44  ;;  %v794_v61 = vpop.f32.mrf.mxu1  ;;  %v2008_v29 = vsel %vm4560_vm5, %v2003_v57, %v2007_v39  ;;  %v2017_v47 = vrot.slane %v2016_v58, 4  ;;  %v1312_v4 = vld [vmem:[#allocation3 + $0x1c] sm:$0x1]  ;;  %v1483_v5 = vrot.slane %v1310_v54, 5  ;;  %v3650_v6 = vrot.slane %v4692_v60, 9  ;;  %v1034_v52 = vpop.f32.mrf.mxu2 }
 0x12b   : > { %1296 = vst [vmem:[#allocation3 + $0x24] sm:$0x1] %v1263_v63  ;;  %v1236_v7 = vmax.f32 %v1228_v22, 0.0  ;;  %v795_v8 = vadd.f32 %v794_v61, %v4636_v48  ;;  %v2123_v9 = vunpack.c.l.b16 %v2008_v29  ;;  %v1487_v10 = vrot.slane %v1312_v4, 5  ;;  %v1311_v27 = vld [vmem:[#allocation3 + $0x18] sm:$0xf]  ;;  %2364 = vmatpush.bf16.msra.mxu0 %v4032_v42 }
 0x12c   : > { %v2022_v13 = vsel %vm4560_vm5, %v2017_v47, %v2021_v28  ;;  %v1484_v14 = vsel %vm4524_vm2, %v3649_v0, %v1483_v5  ;;  %v1350_v15 = vshrl.u32 %v1309_v51, 16  ;;  %v1353_v16 = vshll.u32 %v1309_v51, 16  ;;  %v1207_v0 = vpop.f32.mrf.mxu3 }
 0x12d   : > { %v1244_v21 = vpack.c.bf16 %v1236_v7, %v1236_v7  ;;  %v1044_v24 = vadd.f32 %v1031_v55, %v795_v8  ;;  %v2124_v25 = vunpack.c.l.b16 %v2022_v13  ;;  %v1488_v26 = vsel %vm4524_vm2, %v3650_v6, %v1487_v10  ;;  %v1710_v7 = vld [vmem:[#allocation3 + $0x1c] sm:$0x3] }
 0x12e   : > { %v1523_v48 = vunpack.c.l.b16 %v1484_v14  ;;  %v1524_v30 = vunpack.c.l.b16 %v1488_v26  ;;  %v1352_v31 = vrot.slane %v1350_v15, 4  ;;  %v1355_v32 = vrot.slane %v1353_v16, 5 }
 0x12f   : > { %v1264_v37 = vrot.slane %v1244_v21, 7  ;;  %v1217_v39 = vadd.f32 %v1204_v2, %v1044_v24  ;;  %v2131_v40 = vpack.c.b16 %v2124_v25, %v2123_v9  ;;  %v1359_v41 = vshll.u32 %v1310_v54, 16  ;;  %v1983_v25 = vld [vmem:[#allocation3 + $0x18] sm:$0xf] }
 0x130   : > { %v1530_v43 = vpack.c.b16 %v1524_v30, %v1523_v48  ;;  %v1356_v45 = vor.u32 %v1355_v32, %v1352_v31  ;;  %v1364_v46 = vshrl.u32 %v1311_v27, 16  ;;  %v1367_v38 = vshll.u32 %v1311_v27, 16 }
 0x131   : > { %v1265_v19 = vrot.slane %v1264_v37, 4  ;;  %1297 = vst [vmem:[#allocation3 + $0x28] sm:$0xe] %v1264_v37  ;;  %v1229_v49 = vadd.f32 %v4647_v34, %v1217_v39  ;;  %2195 = vmatmul.bf16.vlgmr.msrb.gmra.mxu3 %v2131_v40  ;;  %v1361_v23 = vrot.slane %v1359_v41, 5  ;;  %v1373_v12 = vshll.u32 %v1312_v4, 16 }
 0x132   : > { %v797_v55 = vpop.f32.mrf.mxu1  ;;  %v1357_v44 = vrot.slane %v1356_v45, 4  ;;  %v1366_v57 = vrot.slane %v1364_v46, 4  ;;  %v1369_v58 = vrot.slane %v1367_v38, 5  ;;  %v1755_v54 = vshrl.u32 %v4685_v50, 16  ;;  %v4717_v40 = vld [vmem:[#allocation3 + $0x1c] sm:$0x1]  ;;  %v1036_v46 = vpop.f32.mrf.mxu2 }
 0x133   : > { %1598 = vmatmul.bf16.gmra.mxu0 %v1530_v43  ;;  %1298 = vst [vmem:[#allocation3 + $0x2c] sm:$0x1] %v1265_v19  ;;  %v1237_v51 = vmax.f32 %v1229_v49, 0.0  ;;  %v798_v63 = vadd.f32 %v797_v55, %v4638_v1  ;;  %v1375_v22 = vrot.slane %v1373_v12, 5  ;;  %v1758_v28 = vshll.u32 %v4685_v50, 16  ;;  %v4031_v12 = vld [vmem:[#allocation9 + $0x110] sm:$0xff] }
 0x134   : > { %v1362_v2 = vsel %vm4560_vm5, %v1357_v44, %v1361_v23  ;;  %v1370_v61 = vor.u32 %v1369_v58, %v1366_v57  ;;  %v1757_v29 = vrot.slane %v1755_v54, 5  ;;  %v1764_v47 = vshrl.u32 %v1709_v33, 16  ;;  %v1985_v43 = vld [vmem:[#allocation3 + $0x20] sm:$0xf]  ;;  %v4044_v23 = vld [vmem:[#allocation9 + $0x178] sm:$0xff]  ;;  %2365 = vmatpush.bf16.msra.mxu0 %v4031_v12  ;;  %v4041_v12 = vld [vmem:[#allocation9 + $0x160] sm:$0xff] }
 0x135   : > { %v1245_v4 = vpack.c.bf16 %v1237_v51, %v1237_v51  ;;  %v1045_v5 = vadd.f32 %v1034_v52, %v798_v63  ;;  %v1616_v6 = vunpack.c.l.b16 %v1362_v2  ;;  %v1760_v8 = vrot.slane %v1758_v28, 6  ;;  %v4060_v52 = vld [vmem:[#allocation9 + $0x1f8] sm:$0xff]  ;;  %v4722_v58 = vld [vmem:[#allocation3 + $0x24] sm:$0x1]  ;;  %v1209_v51 = vpop.f32.mrf.mxu3  ;;  %v4725_v2 = vld [vmem:[#allocation3 + $0x20] sm:$0xe]  ;;  %2629 = vmatpush.bf16.msrb.mxu1 %v4044_v23 }
 0x136   : > { %v1371_v9 = vrot.slane %v1370_v61, 4  ;;  %v1766_v10 = vrot.slane %v1764_v47, 5  ;;  %v1767_v13 = vshll.u32 %v1709_v33, 16  ;;  %v1773_v1 = vshrl.u32 %v4692_v60, 16  ;;  %v4043_v61 = vld [vmem:[#allocation9 + $0x170] sm:$0xff]  ;;  %3048 = vmatpush.bf16.msra.mxu3 %v4060_v52 }
 0x137   : > { %v1266_v14 = vrot.slane %v1245_v4, 7  ;;  %v1218_v50 = vadd.f32 %v1207_v0, %v1045_v5  ;;  %v1761_v15 = vor.u32 %v1760_v8, %v1757_v29  ;;  %v1776_v16 = vshll.u32 %v4692_v60, 16 }
 0x138   : > { %v1376_v18 = vsel %vm4560_vm5, %v1371_v9, %v1375_v22  ;;  %v1769_v20 = vrot.slane %v1767_v13, 6  ;;  %v1775_v21 = vrot.slane %v1773_v1, 5  ;;  %v1782_v24 = vshrl.u32 %v1710_v7, 16  ;;  %v4730_v13 = vld [vmem:[#allocation3 + $0x28] sm:$0xe] }
 0x139   : > { %v1267_v26 = vrot.slane %v1266_v14, 4  ;;  %1299 = vst [vmem:[#allocation3 + $0x30] sm:$0xe] %v1266_v14  ;;  %v1230_v27 = vadd.f32 %v4647_v34, %v1218_v50  ;;  %v1617_v48 = vunpack.c.l.b16 %v1376_v18  ;;  %v1762_v30 = vrot.slane %v1761_v15, 4  ;;  %v1313_v1 = vld [vmem:[#allocation3 + $0x20] sm:$0xf]  ;;  %2630 = vmatpush.bf16.msrb.mxu1 %v4043_v61 }
 0x13a   : > { %v1770_v31 = vor.u32 %v1769_v20, %v1766_v10  ;;  %v1778_v32 = vrot.slane %v1776_v16, 6  ;;  %v1784_v35 = vrot.slane %v1782_v24, 5  ;;  %v1785_v37 = vshll.u32 %v1710_v7, 16  ;;  %v799_v39 = vpop.f32.mrf.mxu1  ;;  %v1316_v18 = vld [vmem:[#allocation3 + $0x2c] sm:$0x1] }
 0x13b   : > { %1300 = vst [vmem:[#allocation3 + $0x34] sm:$0x1] %v1267_v26  ;;  %v1238_v60 = vmax.f32 %v1230_v27, 0.0  ;;  %v1623_v41 = vpack.c.b16 %v1617_v48, %v1616_v6  ;;  %v800_v42 = vadd.f32 %v799_v39, %v4640_v11  ;;  %v2024_v45 = vshrl.u32 %v1983_v25, 16  ;;  %v4050_v11 = vld [vmem:[#allocation9 + $0x1a8] sm:$0xff] }
 0x13c   : > { %v1771_v38 = vsel %vm4655_vm8, %v1762_v30, %v1770_v31  ;;  %v1779_v33 = vor.u32 %v1778_v32, %v1775_v21  ;;  %v1787_v19 = vrot.slane %v1785_v37, 6  ;;  %v2027_v49 = vshll.u32 %v1983_v25, 16  ;;  %v1314_v6 = vld [vmem:[#allocation3 + $0x24] sm:$0x1]  ;;  %2877 = vmatpush.bf16.msra.mxu2 %v4050_v11  ;;  %v4042_v31 = vld [vmem:[#allocation9 + $0x168] sm:$0xff] }
 0x13d   : > { %v1246_v55 = vpack.c.bf16 %v1238_v60, %v1238_v60  ;;  %1691 = vmatmul.bf16.gmra.mxu1 %v1623_v41  ;;  %v1880_v44 = vunpack.c.l.b16 %v1771_v38  ;;  %v1046_v57 = vadd.f32 %v1036_v46, %v800_v42  ;;  %v2026_v54 = vrot.slane %v2024_v45, 4  ;;  %v4030_v39 = vld [vmem:[#allocation9 + $0x108] sm:$0xff]  ;;  %v4059_v60 = vld [vmem:[#allocation9 + $0x1f0] sm:$0xff]  ;;  %v1315_v45 = vld [vmem:[#allocation3 + $0x28] sm:$0xf] }
 0x13e   : > { %v1780_v63 = vrot.slane %v1779_v33, 4  ;;  %v1788_v22 = vor.u32 %v1787_v19, %v1784_v35  ;;  %v2029_v28 = vrot.slane %v2027_v49, 5  ;;  %v2033_v0 = vshll.u32 %v4717_v40, 16  ;;  %v4049_v38 = vld [vmem:[#allocation9 + $0x1a0] sm:$0xff]  ;;  %2631 = vmatpush.bf16.msrb.mxu1 %v4042_v31  ;;  %2366 = vmatpush.bf16.msra.mxu0 %v4030_v39  ;;  %v4040_v39 = vld [vmem:[#allocation9 + $0x158] sm:$0xff] }
 0x13f   : > { %v1268_v29 = vrot.slane %v1246_v55, 7  ;;  %v1219_v47 = vadd.f32 %v1209_v51, %v1046_v57  ;;  %v2038_v4 = vshrl.u32 %v1985_v43, 16  ;;  %v2041_v5 = vshll.u32 %v1985_v43, 16  ;;  %3049 = vmatpush.bf16.msra.mxu3 %v4059_v60  ;;  %v4048_v60 = vld [vmem:[#allocation9 + $0x198] sm:$0xff] }
 0x140   : > { %v1789_v7 = vsel %vm4655_vm8, %v1780_v63, %v1788_v22  ;;  %v2030_v8 = vor.u32 %v2029_v28, %v2026_v54  ;;  %v2035_v9 = vrot.slane %v2033_v0, 5  ;;  %v2047_v10 = vshll.u32 %v4722_v58, 16  ;;  %2878 = vmatpush.bf16.msra.mxu2 %v4049_v38  ;;  %v1989_v31 = vld [vmem:[#allocation3 + $0x30] sm:$0xf] }
 0x141   : > { %v1269_v14 = vrot.slane %v1268_v29, 4  ;;  %1301 = vst [vmem:[#allocation3 + $0x38] sm:$0xe] %v1268_v29  ;;  %v1881_v50 = vunpack.c.l.b16 %v1789_v7  ;;  %v1231_v15 = vadd.f32 %v4647_v34, %v1219_v47  ;;  %v2040_v16 = vrot.slane %v2038_v4, 4  ;;  %v1711_v29 = vld [vmem:[#allocation3 + $0x24] sm:$0x3] }
 0x142   : > { %v2031_v20 = vrot.slane %v2030_v8, 4  ;;  %v2043_v21 = vrot.slane %v2041_v5, 5  ;;  %v2049_v24 = vrot.slane %v2047_v10, 5  ;;  %v3651_v25 = vrot.slane %v4725_v2, 9  ;;  %v1712_v8 = vld [vmem:[#allocation3 + $0x2c] sm:$0x3]  ;;  %2632 = vmatpush.bf16.msrb.mxu1 %v4041_v12 }
 0x143   : > { %1302 = vst [vmem:[#allocation3 + $0x3c] sm:$0x1] %v1269_v14  ;;  %v1887_v26 = vpack.c.b16 %v1881_v50, %v1880_v44  ;;  %v1239_v27 = vmax.f32 %v1231_v15, 0.0  ;;  %v1491_v48 = vrot.slane %v1314_v6, 5  ;;  %v3652_v30 = vrot.slane %v4730_v13, 9  ;;  %v4029_v38 = vld [vmem:[#allocation9 + $0x100] sm:$0xff] }
 0x144   : > { %v2036_v32 = vsel %vm4560_vm5, %v2031_v20, %v2035_v9  ;;  %v2044_v35 = vor.u32 %v2043_v21, %v2040_v16  ;;  %v1495_v34 = vrot.slane %v1316_v18, 5  ;;  %v1378_v37 = vshrl.u32 %v1313_v1, 16  ;;  %v4755_v12 = vld [vmem:[#allocation3 + $0x34] sm:$0x1]  ;;  %2879 = vmatpush.bf16.msra.mxu2 %v4048_v60  ;;  %2367 = vmatpush.bf16.msra.mxu0 %v4029_v38 }
 0x145   : > { %1955 = vmatmul.bf16.gmra.mxu2 %v1887_v26  ;;  %v1247_v41 = vpack.c.bf16 %v1239_v27, %v1239_v27  ;;  %v2125_v42 = vunpack.c.l.b16 %v2036_v32  ;;  %v1492_v43 = vsel %vm4524_vm2, %v3651_v25, %v1491_v48  ;;  %v1381_v46 = vshll.u32 %v1313_v1, 16  ;;  %v4749_v26 = vld [vmem:[#allocation3 + $0x2c] sm:$0x1] }
 0x146   : > { %v2045_v33 = vrot.slane %v2044_v35, 4  ;;  %v1496_v19 = vsel %vm4524_vm2, %v3652_v30, %v1495_v34  ;;  %v1525_v49 = vunpack.c.l.b16 %v1492_v43  ;;  %v1380_v23 = vrot.slane %v1378_v37, 4  ;;  %2633 = vmatpush.bf16.msrb.mxu1 %v4040_v39 }
 0x147   : > { %v1270_v52 = vrot.slane %v1247_v41, 7  ;;  %v1526_v55 = vunpack.c.l.b16 %v1496_v19  ;;  %v1383_v44 = vrot.slane %v1381_v46, 5  ;;  %v1387_v57 = vshll.u32 %v1314_v6, 16  ;;  %v4058_v41 = vld [vmem:[#allocation9 + $0x1e8] sm:$0xff]  ;;  %v4753_v46 = vld [vmem:[#allocation3 + $0x30] sm:$0xe] }
 0x148   : > { %v2050_v54 = vsel %vm4560_vm5, %v2045_v33, %v2049_v24  ;;  %v1392_v11 = vshrl.u32 %v1315_v45, 16  ;;  %v1395_v51 = vshll.u32 %v1315_v45, 16  ;;  %v1401_v63 = vshll.u32 %v1316_v18, 16  ;;  %v1987_v18 = vld [vmem:[#allocation3 + $0x28] sm:$0xf]  ;;  %3050 = vmatpush.bf16.msra.mxu3 %v4058_v41 }
 0x149   : > { %v1271_v22 = vrot.slane %v1270_v52, 4  ;;  %1303 = vst [vmem:[#allocation3 + $0x40] sm:$0xe] %v1270_v52  ;;  %v2126_v28 = vunpack.c.l.b16 %v2050_v54  ;;  %v1531_v0 = vpack.c.b16 %v1526_v55, %v1525_v49  ;;  %v1384_v61 = vor.u32 %v1383_v44, %v1380_v23  ;;  %v4047_v52 = vld [vmem:[#allocation9 + $0x190] sm:$0xff] }
 0x14a   : > { %v1389_v47 = vrot.slane %v1387_v57, 5  ;;  %v1394_v4 = vrot.slane %v1392_v11, 4  ;;  %v1397_v5 = vrot.slane %v1395_v51, 5  ;;  %v1403_v7 = vrot.slane %v1401_v63, 5  ;;  %v4039_v11 = vld [vmem:[#allocation9 + $0x150] sm:$0xff]  ;;  %v4057_v51 = vld [vmem:[#allocation9 + $0x1e0] sm:$0xff]  ;;  %2880 = vmatpush.bf16.msra.mxu2 %v4047_v52 }
 0x14b   : > { %1304 = vst [vmem:[#allocation3 + $0x44] sm:$0x1] %v1271_v22  ;;  %v2132_v6 = vpack.c.b16 %v2126_v28, %v2125_v42  ;;  %1603 = vmatmul.bf16.gmra.mxu0 %v1531_v0  ;;  %v1385_v9 = vrot.slane %v1384_v61, 4  ;;  %v1791_v10 = vshrl.u32 %v4725_v2, 16  ;;  %v1794_v1 = vshll.u32 %v4725_v2, 16  ;;  %2634 = vmatpush.bf16.msrb.mxu1 %v4039_v11 }
 0x14c   : > { %v1398_v14 = vor.u32 %v1397_v5, %v1394_v4  ;;  %v1800_v50 = vshrl.u32 %v1711_v29, 16  ;;  %v1803_v15 = vshll.u32 %v1711_v29, 16  ;;  %v1809_v16 = vshrl.u32 %v4730_v13, 16  ;;  %v1318_v61 = vld [vmem:[#allocation3 + $0x34] sm:$0x1]  ;;  %3051 = vmatpush.bf16.msra.mxu3 %v4057_v51 }
 0x14d   : > { %2200 = vmatmul.bf16.gmra.mxu3 %v2132_v6  ;;  %v1390_v20 = vsel %vm4560_vm5, %v1385_v9, %v1389_v47  ;;  %v1793_v21 = vrot.slane %v1791_v10, 5  ;;  %v1796_v24 = vrot.slane %v1794_v1, 6  ;;  %v1812_v25 = vshll.u32 %v4730_v13, 16  ;;  %v4760_v29 = vld [vmem:[#allocation3 + $0x38] sm:$0xe] }
 0x14e   : > { %v1399_v27 = vrot.slane %v1398_v14, 4  ;;  %v1618_v48 = vunpack.c.l.b16 %v1390_v20  ;;  %v1802_v30 = vrot.slane %v1800_v50, 5  ;;  %v1805_v2 = vrot.slane %v1803_v15, 6  ;;  %v1317_v6 = vld [vmem:[#allocation3 + $0x30] sm:$0xf]  ;;  %v4046_v50 = vld [vmem:[#allocation9 + $0x188] sm:$0xff] }
 0x14f   : > { %v1797_v32 = vor.u32 %v1796_v24, %v1793_v21  ;;  %v1811_v35 = vrot.slane %v1809_v16, 5  ;;  %v1814_v34 = vrot.slane %v1812_v25, 6  ;;  %v1818_v37 = vshrl.u32 %v1712_v8, 16  ;;  %v4068_v15 = vld [vmem:[#allocation9 + $0x238] sm:$0xff]  ;;  %v4038_v24 = vld [vmem:[#allocation9 + $0x148] sm:$0xff]  ;;  %2881 = vmatpush.bf16.msra.mxu2 %v4046_v50 }
 0x150   : > { %v1404_v42 = vsel %vm4560_vm5, %v1399_v27, %v1403_v7  ;;  %v1806_v43 = vor.u32 %v1805_v2, %v1802_v30  ;;  %v1821_v45 = vshll.u32 %v1712_v8, 16  ;;  %v2052_v13 = vshrl.u32 %v1987_v18, 16  ;;  %v1320_v8 = vld [vmem:[#allocation3 + $0x3c] sm:$0x1]  ;;  %v4056_v25 = vld [vmem:[#allocation9 + $0x1d8] sm:$0xff]  ;;  %3317 = vmatpush.bf16.msrb.mxu0 %v4068_v15  ;;  %2635 = vmatpush.bf16.msrb.mxu1 %v4038_v24 }
 0x151   : > { %v1619_v33 = vunpack.c.l.b16 %v1404_v42  ;;  %v1798_v19 = vrot.slane %v1797_v32, 4  ;;  %v1815_v49 = vor.u32 %v1814_v34, %v1811_v35  ;;  %v1820_v23 = vrot.slane %v1818_v37, 5  ;;  %v1319_v35 = vld [vmem:[#allocation3 + $0x38] sm:$0xf]  ;;  %3052 = vmatpush.bf16.msra.mxu3 %v4056_v25 }
 0x152   : > { %v1823_v55 = vrot.slane %v1821_v45, 6  ;;  %v2054_v44 = vrot.slane %v2052_v13, 4  ;;  %v2055_v57 = vshll.u32 %v1987_v18, 16  ;;  %v2061_v54 = vshll.u32 %v4749_v26, 16 }
 0x153   : > { %v1624_v63 = vpack.c.b16 %v1619_v33, %v1618_v48  ;;  %v1807_v22 = vsel %vm4655_vm8, %v1798_v19, %v1806_v43  ;;  %v1816_v28 = vrot.slane %v1815_v49, 4  ;;  %v2066_v0 = vshrl.u32 %v1989_v31, 16  ;;  %v4045_v43 = vld [vmem:[#allocation9 + $0x180] sm:$0xff] }
 0x154   : > { %v1824_v47 = vor.u32 %v1823_v55, %v1820_v23  ;;  %v1882_v4 = vunpack.c.l.b16 %v1807_v22  ;;  %v2057_v5 = vrot.slane %v2055_v57, 5  ;;  %v2063_v7 = vrot.slane %v2061_v54, 5  ;;  %v4037_v19 = vld [vmem:[#allocation9 + $0x140] sm:$0xff]  ;;  %2882 = vmatpush.bf16.msra.mxu2 %v4045_v43 }
 0x155   : > { %1696 = vmatmul.bf16.gmra.mxu1 %v1624_v63  ;;  %v2068_v9 = vrot.slane %v2066_v0, 4  ;;  %v2069_v10 = vshll.u32 %v1989_v31, 16  ;;  %v2075_v1 = vshll.u32 %v4755_v12, 16  ;;  %v3653_v14 = vrot.slane %v4753_v46, 9  ;;  %v1713_v63 = vld [vmem:[#allocation3 + $0x34] sm:$0x3] }
 0x156   : > { %v1825_v16 = vsel %vm4655_vm8, %v1816_v28, %v1824_v47  ;;  %v2058_v18 = vor.u32 %v2057_v5, %v2054_v44  ;;  %v1499_v20 = vrot.slane %v1318_v61, 5  ;;  %v3654_v21 = vrot.slane %v4760_v29, 9  ;;  %v4055_v44 = vld [vmem:[#allocation9 + $0x1d0] sm:$0xff]  ;;  %2636 = vmatpush.bf16.msrb.mxu1 %v4037_v19 }
 0x157   : > { %v1883_v27 = vunpack.c.l.b16 %v1825_v16  ;;  %v2071_v48 = vrot.slane %v2069_v10, 5  ;;  %v2077_v30 = vrot.slane %v2075_v1, 5  ;;  %v1503_v2 = vrot.slane %v1320_v8, 5  ;;  %3053 = vmatpush.bf16.msra.mxu3 %v4055_v44 }
 0x158   : > { %v2059_v31 = vrot.slane %v2058_v18, 4  ;;  %v1500_v32 = vsel %vm4524_vm2, %v3653_v14, %v1499_v20  ;;  %v1406_v34 = vshrl.u32 %v1317_v6, 16  ;;  %v1409_v37 = vshll.u32 %v1317_v6, 16  ;;  %v1714_v6 = vld [vmem:[#allocation3 + $0x3c] sm:$0x3]  ;;  %4078 = vmatpush.bf16.msrb.mxu2 %v4068_v15 }
 0x159   : > { %v1888_v39 = vpack.c.b16 %v1883_v27, %v1882_v4  ;;  %v2072_v60 = vor.u32 %v2071_v48, %v2068_v9  ;;  %v1504_v41 = vsel %vm4524_vm2, %v3654_v21, %v1503_v2  ;;  %v1527_v42 = vunpack.c.l.b16 %v1500_v32  ;;  %v1991_v20 = vld [vmem:[#allocation3 + $0x38] sm:$0xf]  ;;  %v4781_v32 = vld [vmem:[#allocation3 + $0x3c] sm:$0x1] }
 0x15a   : > { %v2064_v45 = vsel %vm4560_vm5, %v2059_v31, %v2063_v7  ;;  %v1528_v13 = vunpack.c.l.b16 %v1504_v41  ;;  %v1408_v38 = vrot.slane %v1406_v34, 4  ;;  %v1411_v33 = vrot.slane %v1409_v37, 5  ;;  %v4054_v48 = vld [vmem:[#allocation9 + $0x1c8] sm:$0xff]  ;;  %v4053_v41 = vld [vmem:[#allocation9 + $0x1c0] sm:$0xff] }
 0x15b   : > { %1960 = vmatmul.bf16.gmra.mxu2 %v1888_v39  ;;  %v2073_v49 = vrot.slane %v2072_v60, 4  ;;  %v2127_v23 = vunpack.c.l.b16 %v2064_v45  ;;  %v1415_v52 = vshll.u32 %v1318_v61, 16  ;;  %v1420_v55 = vshrl.u32 %v1319_v35, 16  ;;  %v1993_v39 = vld [vmem:[#allocation3 + $0x40] sm:$0xf]  ;;  %3054 = vmatpush.bf16.msra.mxu3 %v4054_v48 }
 0x15c   : > { %v1532_v57 = vpack.c.b16 %v1528_v13, %v1527_v42  ;;  %v1412_v54 = vor.u32 %v1411_v33, %v1408_v38  ;;  %v1423_v11 = vshll.u32 %v1319_v35, 16  ;;  %v1429_v51 = vshll.u32 %v1320_v8, 16  ;;  %v4066_v38 = vld [vmem:[#allocation9 + $0x228] sm:$0xff]  ;;  %v2398_v48 = vld [vmem:[#allocation3 + $0x14] sm:$0x3] }
 0x15d   : > { %v2078_v22 = vsel %vm4560_vm5, %v2073_v49, %v2077_v30  ;;  %v1417_v28 = vrot.slane %v1415_v52, 5  ;;  %v1422_v0 = vrot.slane %v1420_v55, 4  ;;  %v1827_v47 = vshrl.u32 %v4753_v46, 16  ;;  %v4067_v30 = vld [vmem:[#allocation9 + $0x230] sm:$0xff] }
 0x15e   : > { %v2128_v4 = vunpack.c.l.b16 %v2078_v22  ;;  %1608 = vmatmul.bf16.gmra.mxu0 %v1532_v57  ;;  %v1413_v5 = vrot.slane %v1412_v54, 4  ;;  %v1425_v7 = vrot.slane %v1423_v11, 5  ;;  %v1431_v61 = vrot.slane %v1429_v51, 5  ;;  %4079 = vmatpush.bf16.msrb.mxu2 %v4067_v30  ;;  %v4785_v55 = vld [vmem:[#allocation3 + $0x44] sm:$0x1] }
 0x15f   : > { %v1829_v9 = vrot.slane %v1827_v47, 5  ;;  %v1830_v10 = vshll.u32 %v4753_v46, 16  ;;  %v1836_v8 = vshrl.u32 %v1713_v63, 16  ;;  %v1839_v1 = vshll.u32 %v1713_v63, 16  ;;  %3318 = vmatpush.bf16.msrb.mxu0 %v4067_v30  ;;  %3055 = vmatpush.bf16.msra.mxu3 %v4053_v41  ;;  %v2667_v41 = vld [vmem:[#allocation3 + $0x10] sm:$0xf] }
 0x160   : > { %v2133_v14 = vpack.c.b16 %v2128_v4, %v2127_v23  ;;  %v1418_v50 = vsel %vm4560_vm5, %v1413_v5, %v1417_v28  ;;  %v1426_v16 = vor.u32 %v1425_v7, %v1422_v0  ;;  %v1845_v18 = vshrl.u32 %v4760_v29, 16  ;;  %v2224_v23 = vld [vmem:[#allocation3 + $0x8] sm:$0xe]  ;;  %v2225_v28 = vld [vmem:[#allocation3 + $0x10] sm:$0xe] }
 0x161   : > { %v1620_v21 = vunpack.c.l.b16 %v1418_v50  ;;  %v1832_v24 = vrot.slane %v1830_v10, 6  ;;  %v1838_v25 = vrot.slane %v1836_v8, 5  ;;  %v1841_v27 = vrot.slane %v1839_v1, 6 }
 0x162   : > { %2205 = vmatmul.bf16.gmra.mxu3 %v2133_v14  ;;  %v1427_v46 = vrot.slane %v1426_v16, 4  ;;  %v1847_v2 = vrot.slane %v1845_v18, 5  ;;  %v1848_v31 = vshll.u32 %v4760_v29, 16  ;;  %v1854_v15 = vshrl.u32 %v1714_v6, 16  ;;  %4080 = vmatpush.bf16.msrb.mxu2 %v4066_v38 }
 0x163   : > { %v1833_v35 = vor.u32 %v1832_v24, %v1829_v9  ;;  %v1842_v34 = vor.u32 %v1841_v27, %v1838_v25  ;;  %v1857_v37 = vshll.u32 %v1714_v6, 16  ;;  %v2080_v60 = vshrl.u32 %v1991_v20, 16  ;;  %3319 = vmatpush.bf16.msrb.mxu0 %v4066_v38 }
 0x164   : > { %v1432_v42 = vsel %vm4560_vm5, %v1427_v46, %v1431_v61  ;;  %v1850_v43 = vrot.slane %v1848_v31, 6  ;;  %v1856_v45 = vrot.slane %v1854_v15, 5  ;;  %v2083_v13 = vshll.u32 %v1991_v20, 16 }
 0x165   : > { %v1621_v29 = vunpack.c.l.b16 %v1432_v42  ;;  %v1834_v33 = vrot.slane %v1833_v35, 4  ;;  %v1859_v19 = vrot.slane %v1857_v37, 6  ;;  %v2082_v49 = vrot.slane %v2080_v60, 4 }
 0x166   : > { %v1851_v52 = vor.u32 %v1850_v43, %v1847_v2  ;;  %v2085_v44 = vrot.slane %v2083_v13, 5  ;;  %v2089_v57 = vshll.u32 %v4781_v32, 16  ;;  %v2094_v54 = vshrl.u32 %v1993_v39, 16  ;;  %v2668_v13 = vld [vmem:[#allocation3 + $0x14] sm:$0x1] }
 0x167   : > { %v1625_v11 = vpack.c.b16 %v1621_v29, %v1620_v21  ;;  %v1843_v51 = vsel %vm4655_vm8, %v1834_v33, %v1842_v34  ;;  %v1860_v63 = vor.u32 %v1859_v19, %v1856_v45  ;;  %v2097_v22 = vshll.u32 %v1993_v39, 16  ;;  %v2397_v21 = vld [vmem:[#allocation3 + $0xc] sm:$0x3] }
 0x168   : > { %v1852_v0 = vrot.slane %v1851_v52, 4  ;;  %v1884_v47 = vunpack.c.l.b16 %v1843_v51  ;;  %v2086_v4 = vor.u32 %v2085_v44, %v2082_v49  ;;  %v2091_v5 = vrot.slane %v2089_v57, 5  ;;  %v2669_v49 = vld [vmem:[#allocation3 + $0x18] sm:$0xf] }
 0x169   : > { %1701 = vmatmul.bf16.gmra.mxu1 %v1625_v11  ;;  %v2096_v7 = vrot.slane %v2094_v54, 4  ;;  %v2099_v61 = vrot.slane %v2097_v22, 5  ;;  %v2103_v6 = vshll.u32 %v4785_v55, 16  ;;  %v3783_v9 = vrot.slane %v2224_v23, 9  ;;  %v4065_v54 = vld [vmem:[#allocation9 + $0x220] sm:$0xff] }
 0x16a   : > { %v1861_v10 = vsel %vm4655_vm8, %v1852_v0, %v1860_v63  ;;  %v2087_v8 = vrot.slane %v2086_v4, 4  ;;  %v3784_v1 = vrot.slane %v2225_v28, 9  ;;  %v2406_v14 = vshrl.u32 %v2224_v23, 16  ;;  %v2670_v63 = vld [vmem:[#allocation3 + $0x1c] sm:$0x1]  ;;  %3320 = vmatpush.bf16.msrb.mxu0 %v4065_v54  ;;  %4081 = vmatpush.bf16.msrb.mxu2 %v4065_v54 }
 0x16b   : > { %v1885_v50 = vunpack.c.l.b16 %v1861_v10  ;;  %v2100_v16 = vor.u32 %v2099_v61, %v2096_v7  ;;  %v2105_v18 = vrot.slane %v2103_v6, 5  ;;  %v2251_v20 = vsel %vm4524_vm2, %v3783_v9, %v2250_v53  ;;  %v4805_v7 = vld [vmem:[#allocation3 + $0x10] sm:$0xe] }
 0x16c   : > { %v2092_v24 = vsel %vm4560_vm5, %v2087_v8, %v2091_v5  ;;  %v2255_v25 = vsel %vm4524_vm2, %v3784_v1, %v2254_v59  ;;  %v2296_v27 = vunpack.c.l.b16 %v2251_v20  ;;  %v2408_v30 = vrot.slane %v2406_v14, 5  ;;  %v4807_v8 = vld [vmem:[#allocation3 + $0x18] sm:$0xe]  ;;  %v4064_v1 = vld [vmem:[#allocation9 + $0x218] sm:$0xff] }
 0x16d   : > { %v1889_v46 = vpack.c.b16 %v1885_v50, %v1884_v47  ;;  %v2101_v2 = vrot.slane %v2100_v16, 4  ;;  %v2129_v31 = vunpack.c.l.b16 %v2092_v24  ;;  %v2297_v15 = vunpack.c.l.b16 %v2255_v25  ;;  %v2226_v20 = vld [vmem:[#allocation3 + $0x18] sm:$0xe] }
 0x16e   : > { %v2409_v3 = vshll.u32 %v2224_v23, 16  ;;  %v2415_v35 = vshrl.u32 %v2397_v21, 16  ;;  %v2418_v34 = vshll.u32 %v2397_v21, 16  ;;  %v2424_v53 = vshrl.u32 %v2225_v28, 16  ;;  %3321 = vmatpush.bf16.msrb.mxu0 %v4064_v1  ;;  %4082 = vmatpush.bf16.msrb.mxu2 %v4064_v1  ;;  %v2673_v1 = vld [vmem:[#allocation3 + $0x28] sm:$0xf] }
 0x16f   : > { %1965 = vmatmul.bf16.gmra.mxu2 %v1889_v46  ;;  %v2106_v37 = vsel %vm4560_vm5, %v2101_v2, %v2105_v18  ;;  %v2304_v39 = vpack.c.b16 %v2297_v15, %v2296_v27  ;;  %v2427_v36 = vshll.u32 %v2225_v28, 16  ;;  %v2433_v60 = vshrl.u32 %v2398_v48, 16 }
 0x170   : > { %v2130_v59 = vunpack.c.l.b16 %v2106_v37  ;;  %v2411_v42 = vrot.slane %v2409_v3, 6  ;;  %v2417_v43 = vrot.slane %v2415_v35, 5  ;;  %v2420_v45 = vrot.slane %v2418_v34, 6 }
 0x171   : > { %2368 = vmatmul.bf16.vlgmr.msra.gmra.mxu0 %v2304_v39  ;;  %v2426_v38 = vrot.slane %v2424_v53, 5  ;;  %v2429_v29 = vrot.slane %v2427_v36, 6  ;;  %v2435_v33 = vrot.slane %v2433_v60, 5  ;;  %v2436_v19 = vshll.u32 %v2398_v48, 16 }
 0x172   : > { %v2134_v23 = vpack.c.b16 %v2130_v59, %v2129_v31  ;;  %v2412_v52 = vor.u32 %v2411_v42, %v2408_v30  ;;  %v2421_v44 = vor.u32 %v2420_v45, %v2417_v43  ;;  %v2684_v57 = vshrl.u32 %v2667_v41, 16  ;;  %v2227_v31 = vld [vmem:[#allocation3 + $0x20] sm:$0xe]  ;;  %v2399_v43 = vld [vmem:[#allocation3 + $0x1c] sm:$0x3] }
 0x173   : > { %v2430_v11 = vor.u32 %v2429_v29, %v2426_v38  ;;  %v2438_v51 = vrot.slane %v2436_v19, 6  ;;  %v2687_v22 = vshll.u32 %v2667_v41, 16  ;;  %v2693_v28 = vshll.u32 %v2668_v13, 16 }
 0x174   : > { %2210 = vmatmul.bf16.gmra.mxu3 %v2134_v23  ;;  %v2413_v0 = vrot.slane %v2412_v52, 4  ;;  %v2686_v47 = vrot.slane %v2684_v57, 4  ;;  %v2698_v4 = vshrl.u32 %v2669_v49, 16  ;;  %v2701_v5 = vshll.u32 %v2669_v49, 16  ;;  %v2400_v52 = vld [vmem:[#allocation3 + $0x24] sm:$0x3] }
 0x175   : > { %v2431_v61 = vrot.slane %v2430_v11, 4  ;;  %v2439_v6 = vor.u32 %v2438_v51, %v2435_v33  ;;  %v2689_v9 = vrot.slane %v2687_v22, 5  ;;  %v2695_v10 = vrot.slane %v2693_v28, 5  ;;  %v2671_v28 = vld [vmem:[#allocation3 + $0x20] sm:$0xf] }
 0x176   : > { %v2422_v14 = vsel %vm4655_vm8, %v2413_v0, %v2421_v44  ;;  %v2700_v50 = vrot.slane %v2698_v4, 4  ;;  %v2703_v16 = vrot.slane %v2701_v5, 5  ;;  %v2707_v18 = vshll.u32 %v2670_v63, 16 }
 0x177   : > { %v2440_v21 = vsel %vm4655_vm8, %v2431_v61, %v2439_v6  ;;  %v2565_v24 = vunpack.c.l.b16 %v2422_v14  ;;  %v2690_v25 = vor.u32 %v2689_v9, %v2686_v47  ;;  %v3887_v27 = vrot.slane %v4805_v7, 9  ;;  %v2672_v61 = vld [vmem:[#allocation3 + $0x24] sm:$0x1] }
 0x178   : > { %v2566_v48 = vunpack.c.l.b16 %v2440_v21  ;;  %v2704_v30 = vor.u32 %v2703_v16, %v2700_v50  ;;  %v2709_v46 = vrot.slane %v2707_v18, 5  ;;  %v2938_v2 = vrot.slane %v2668_v13, 5  ;;  %v2674_v18 = vld [vmem:[#allocation3 + $0x2c] sm:$0x1] }
 0x179   : > { %v2691_v15 = vrot.slane %v2690_v25, 4  ;;  %v3888_v3 = vrot.slane %v4807_v8, 9  ;;  %v2942_v35 = vrot.slane %v2670_v63, 5  ;;  %v3785_v34 = vrot.slane %v2226_v20, 9 }
 0x17a   : > { %v2573_v53 = vpack.c.b16 %v2566_v48, %v2565_v24  ;;  %v2705_v37 = vrot.slane %v2704_v30, 4  ;;  %v2939_v39 = vsel %vm4524_vm2, %v3887_v27, %v2938_v2  ;;  %v2258_v36 = vrot.slane %v4717_v40, 5  ;;  %v4063_v48 = vld [vmem:[#allocation9 + $0x210] sm:$0xff] }
 0x17b   : > { %v2696_v60 = vsel %vm4560_vm5, %v2691_v15, %v2695_v10  ;;  %v2943_v41 = vsel %vm4524_vm2, %v3888_v3, %v2942_v35  ;;  %v2984_v59 = vunpack.c.l.b16 %v2939_v39  ;;  %v3786_v42 = vrot.slane %v2227_v31, 9  ;;  %3322 = vmatpush.bf16.msrb.mxu0 %v4063_v48  ;;  %v4062_v39 = vld [vmem:[#allocation9 + $0x208] sm:$0xff]  ;;  %4083 = vmatpush.bf16.msrb.mxu2 %v4063_v48 }
 0x17c   : > { %2637 = vmatmul.bf16.vlgmr.msrb.gmra.mxu1 %v2573_v53  ;;  %v2710_v45 = vsel %vm4560_vm5, %v2705_v37, %v2709_v46  ;;  %v2811_v13 = vunpack.c.l.b16 %v2696_v60  ;;  %v2985_v38 = vunpack.c.l.b16 %v2943_v41  ;;  %v2259_v29 = vsel %vm4524_vm2, %v3785_v34, %v2258_v36  ;;  %v4831_v37 = vld [vmem:[#allocation3 + $0x28] sm:$0xe] }
 0x17d   : > { %v2812_v33 = vunpack.c.l.b16 %v2710_v45  ;;  %v2262_v40 = vrot.slane %v4722_v58, 5  ;;  %v2298_v19 = vunpack.c.l.b16 %v2259_v29  ;;  %v2442_v49 = vshrl.u32 %v2226_v20, 16 }
 0x17e   : > { %v2992_v23 = vpack.c.b16 %v2985_v38, %v2984_v59  ;;  %v2445_v44 = vshll.u32 %v2226_v20, 16  ;;  %v2451_v57 = vshrl.u32 %v2399_v43, 16  ;;  %v2454_v54 = vshll.u32 %v2399_v43, 16  ;;  %v2228_v38 = vld [vmem:[#allocation3 + $0x28] sm:$0xe] }
 0x17f   : > { %v2819_v11 = vpack.c.b16 %v2812_v33, %v2811_v13  ;;  %v2263_v51 = vsel %vm4524_vm2, %v3786_v42, %v2262_v40  ;;  %v2444_v63 = vrot.slane %v2442_v49, 5  ;;  %v2460_v22 = vshrl.u32 %v2227_v31, 16  ;;  %3323 = vmatpush.bf16.msrb.mxu0 %v4062_v39  ;;  %4084 = vmatpush.bf16.msrb.mxu2 %v4062_v39 }
 0x180   : > { %v2299_v0 = vunpack.c.l.b16 %v2263_v51  ;;  %v2447_v47 = vrot.slane %v2445_v44, 6  ;;  %v2453_v4 = vrot.slane %v2451_v57, 5  ;;  %v2456_v5 = vrot.slane %v2454_v54, 6 }
 0x181   : > { %2883 = vmatmul.bf16.vlgmr.msra.gmra.mxu2 %v2819_v11  ;;  %v2462_v58 = vrot.slane %v2460_v22, 5  ;;  %v2463_v6 = vshll.u32 %v2227_v31, 16  ;;  %v2469_v9 = vshrl.u32 %v2400_v52, 16  ;;  %v2472_v10 = vshll.u32 %v2400_v52, 16  ;;  %v4829_v31 = vld [vmem:[#allocation3 + $0x20] sm:$0xe] }
 0x182   : > { %v2305_v14 = vpack.c.b16 %v2299_v0, %v2298_v19  ;;  %v2448_v50 = vor.u32 %v2447_v47, %v2444_v63  ;;  %v2457_v16 = vor.u32 %v2456_v5, %v2453_v4  ;;  %v2712_v20 = vshrl.u32 %v2671_v28, 16  ;;  %v2229_v11 = vld [vmem:[#allocation3 + $0x30] sm:$0xe] }
 0x183   : > { %v2465_v21 = vrot.slane %v2463_v6, 6  ;;  %v2471_v24 = vrot.slane %v2469_v9, 5  ;;  %v2474_v25 = vrot.slane %v2472_v10, 6  ;;  %v2715_v27 = vshll.u32 %v2671_v28, 16  ;;  %v2401_v6 = vld [vmem:[#allocation3 + $0x2c] sm:$0x3] }
 0x184   : > { %3056 = vmatmul.bf16.vlgmr.msra.gmra.mxu3 %v2992_v23  ;;  %2373 = vmatmul.bf16.gmra.mxu0 %v2305_v14  ;;  %v2449_v30 = vrot.slane %v2448_v50, 4  ;;  %v2714_v46 = vrot.slane %v2712_v20, 4  ;;  %v2721_v2 = vshll.u32 %v2672_v61, 16  ;;  %v2726_v15 = vshrl.u32 %v2673_v1, 16 }
 0x185   : > { %v2466_v3 = vor.u32 %v2465_v21, %v2462_v58  ;;  %v2475_v35 = vor.u32 %v2474_v25, %v2471_v24  ;;  %v2717_v34 = vrot.slane %v2715_v27, 5  ;;  %v2729_v53 = vshll.u32 %v2673_v1, 16  ;;  %v2402_v25 = vld [vmem:[#allocation3 + $0x34] sm:$0x3] }
 0x186   : > { %v2458_v36 = vsel %vm4655_vm8, %v2449_v30, %v2457_v16  ;;  %v2723_v60 = vrot.slane %v2721_v2, 5  ;;  %v2728_v41 = vrot.slane %v2726_v15, 4  ;;  %v2735_v59 = vshll.u32 %v2674_v18, 16  ;;  %v2675_v15 = vld [vmem:[#allocation3 + $0x30] sm:$0xf] }
 0x187   : > { %v2467_v42 = vrot.slane %v2466_v3, 4  ;;  %v2567_v43 = vunpack.c.l.b16 %v2458_v36  ;;  %v2718_v45 = vor.u32 %v2717_v34, %v2714_v46  ;;  %v2731_v13 = vrot.slane %v2729_v53, 5  ;;  %v2676_v53 = vld [vmem:[#allocation3 + $0x34] sm:$0x1] }
 0x188   : > { %v2737_v29 = vrot.slane %v2735_v59, 5  ;;  %v3889_v33 = vrot.slane %v4829_v31, 9  ;;  %v2946_v40 = vrot.slane %v2672_v61, 5  ;;  %v3890_v19 = vrot.slane %v4831_v37, 9 }
 0x189   : > { %v2476_v49 = vsel %vm4655_vm8, %v2467_v42, %v2475_v35  ;;  %v2719_v23 = vrot.slane %v2718_v45, 4  ;;  %v2732_v52 = vor.u32 %v2731_v13, %v2728_v41  ;;  %v2950_v44 = vrot.slane %v2674_v18, 5 }
 0x18a   : > { %v2568_v57 = vunpack.c.l.b16 %v2476_v49  ;;  %v2947_v54 = vsel %vm4524_vm2, %v3889_v33, %v2946_v40  ;;  %v3787_v51 = vrot.slane %v2228_v38, 9  ;;  %v2266_v63 = vrot.slane %v4749_v26, 5 }
 0x18b   : > { %v2724_v22 = vsel %vm4560_vm5, %v2719_v23, %v2723_v60  ;;  %v2733_v28 = vrot.slane %v2732_v52, 4  ;;  %v2951_v0 = vsel %vm4524_vm2, %v3890_v19, %v2950_v44  ;;  %v2986_v47 = vunpack.c.l.b16 %v2947_v54  ;;  %v2678_v23 = vld [vmem:[#allocation3 + $0x3c] sm:$0x1] }
 0x18c   : > { %v2574_v4 = vpack.c.b16 %v2568_v57, %v2567_v43  ;;  %v2813_v5 = vunpack.c.l.b16 %v2724_v22  ;;  %v2987_v61 = vunpack.c.l.b16 %v2951_v0  ;;  %v2267_v58 = vsel %vm4524_vm2, %v3787_v51, %v2266_v63  ;;  %v2677_v43 = vld [vmem:[#allocation3 + $0x38] sm:$0xf]  ;;  %v4061_v57 = vld [vmem:[#allocation9 + $0x200] sm:$0xff] }
 0x18d   : > { %v2738_v9 = vsel %vm4560_vm5, %v2733_v28, %v2737_v29  ;;  %v3788_v10 = vrot.slane %v2229_v11, 9  ;;  %v2270_v26 = vrot.slane %v4755_v12, 5  ;;  %v2300_v1 = vunpack.c.l.b16 %v2267_v58  ;;  %v4853_v63 = vld [vmem:[#allocation3 + $0x30] sm:$0xe]  ;;  %3324 = vmatpush.bf16.msrb.mxu0 %v4061_v57  ;;  %4085 = vmatpush.bf16.msrb.mxu2 %v4061_v57 }
 0x18e   : > { %2642 = vmatmul.bf16.gmra.mxu1 %v2574_v4  ;;  %v2814_v14 = vunpack.c.l.b16 %v2738_v9  ;;  %v2993_v50 = vpack.c.b16 %v2987_v61, %v2986_v47  ;;  %v2478_v16 = vshrl.u32 %v2228_v38, 16  ;;  %v2481_v18 = vshll.u32 %v2228_v38, 16  ;;  %v4857_v47 = vld [vmem:[#allocation3 + $0x38] sm:$0xe] }
 0x18f   : > { %v2271_v20 = vsel %vm4524_vm2, %v3788_v10, %v2270_v26  ;;  %v2496_v21 = vshrl.u32 %v2229_v11, 16  ;;  %v2499_v24 = vshll.u32 %v2229_v11, 16  ;;  %v2487_v27 = vshrl.u32 %v2401_v6, 16 }
 0x190   : > { %v2820_v48 = vpack.c.b16 %v2814_v14, %v2813_v5  ;;  %v2301_v30 = vunpack.c.l.b16 %v2271_v20  ;;  %v2480_v46 = vrot.slane %v2478_v16, 5  ;;  %v2483_v2 = vrot.slane %v2481_v18, 6  ;;  %v2230_v18 = vld [vmem:[#allocation3 + $0x38] sm:$0xe] }
 0x191   : > { %v2489_v3 = vrot.slane %v2487_v27, 5  ;;  %v2490_v12 = vshll.u32 %v2401_v6, 16  ;;  %v2498_v35 = vrot.slane %v2496_v21, 5  ;;  %v2501_v34 = vrot.slane %v2499_v24, 6  ;;  %v2231_v24 = vld [vmem:[#allocation3 + $0x40] sm:$0xe] }
 0x192   : > { %2888 = vmatmul.bf16.gmra.mxu2 %v2820_v48  ;;  %v2306_v39 = vpack.c.b16 %v2301_v30, %v2300_v1  ;;  %v2484_v36 = vor.u32 %v2483_v2, %v2480_v46  ;;  %v2505_v60 = vshrl.u32 %v2402_v25, 16  ;;  %v2508_v41 = vshll.u32 %v2402_v25, 16 }
 0x193   : > { %v2492_v59 = vrot.slane %v2490_v12, 6  ;;  %v2502_v42 = vor.u32 %v2501_v34, %v2498_v35  ;;  %v2740_v45 = vshrl.u32 %v2675_v15, 16  ;;  %v2743_v13 = vshll.u32 %v2675_v15, 16 }
 0x194   : > { %3061 = vmatmul.bf16.gmra.mxu3 %v2993_v50  ;;  %2378 = vmatmul.bf16.gmra.mxu0 %v2306_v39  ;;  %v2485_v38 = vrot.slane %v2484_v36, 4  ;;  %v2507_v29 = vrot.slane %v2505_v60, 5  ;;  %v2510_v33 = vrot.slane %v2508_v41, 6  ;;  %v2749_v40 = vshll.u32 %v2676_v53, 16 }
 0x195   : > { %v2493_v19 = vor.u32 %v2492_v59, %v2489_v3  ;;  %v2503_v49 = vrot.slane %v2502_v42, 4  ;;  %v2742_v52 = vrot.slane %v2740_v45, 4  ;;  %v2745_v44 = vrot.slane %v2743_v13, 5  ;;  %v2403_v59 = vld [vmem:[#allocation3 + $0x3c] sm:$0x3] }
 0x196   : > { %v2511_v54 = vor.u32 %v2510_v33, %v2507_v29  ;;  %v2754_v11 = vshrl.u32 %v2677_v43, 16  ;;  %v2757_v51 = vshll.u32 %v2677_v43, 16  ;;  %v2751_v0 = vrot.slane %v2749_v40, 5 }
 0x197   : > { %v2494_v22 = vsel %vm4655_vm8, %v2485_v38, %v2493_v19  ;;  %v2746_v28 = vor.u32 %v2745_v44, %v2742_v52  ;;  %v2763_v58 = vshll.u32 %v2678_v23, 16  ;;  %v3891_v10 = vrot.slane %v4853_v63, 9  ;;  %v2404_v38 = vld [vmem:[#allocation3 + $0x44] sm:$0x3]  ;;  %v2679_v19 = vld [vmem:[#allocation3 + $0x40] sm:$0xf] }
 0x198   : > { %v2512_v4 = vsel %vm4655_vm8, %v2503_v49, %v2511_v54  ;;  %v2756_v5 = vrot.slane %v2754_v11, 4  ;;  %v2759_v61 = vrot.slane %v2757_v51, 5  ;;  %v2954_v26 = vrot.slane %v2676_v53, 5 }
 0x199   : > { %v2570_v6 = vunpack.c.l.b16 %v2512_v4  ;;  %v2747_v9 = vrot.slane %v2746_v28, 4  ;;  %v2569_v1 = vunpack.c.l.b16 %v2494_v22  ;;  %v3892_v50 = vrot.slane %v4857_v47, 9  ;;  %v2680_v22 = vld [vmem:[#allocation3 + $0x44] sm:$0x1] }
 0x19a   : > { %v2760_v14 = vor.u32 %v2759_v61, %v2756_v5  ;;  %v2958_v16 = vrot.slane %v2678_v23, 5  ;;  %v2955_v21 = vsel %vm4524_vm2, %v3891_v10, %v2954_v26  ;;  %v2765_v48 = vrot.slane %v2763_v58, 5  ;;  %v2681_v5 = vld [vmem:[#allocation3 + $0x48] sm:$0xf] }
 0x19b   : > { %v2752_v20 = vsel %vm4560_vm5, %v2747_v9, %v2751_v0  ;;  %v2575_v25 = vpack.c.b16 %v2570_v6, %v2569_v1  ;;  %v2988_v2 = vunpack.c.l.b16 %v2955_v21  ;;  %v3789_v3 = vrot.slane %v2230_v18, 9 }
 0x19c   : > { %v2761_v27 = vrot.slane %v2760_v14, 4  ;;  %v2959_v30 = vsel %vm4524_vm2, %v3892_v50, %v2958_v16  ;;  %v2815_v46 = vunpack.c.l.b16 %v2752_v20  ;;  %v2274_v35 = vrot.slane %v4781_v32, 5  ;;  %v2918_v16 = vld [vmem:[#allocation3 + $0x40] sm:$0xe] }
 0x19d   : > { %v2989_v15 = vunpack.c.l.b16 %v2959_v30  ;;  %v3790_v34 = vrot.slane %v2231_v24, 9  ;;  %v2278_v53 = vrot.slane %v4785_v55, 5  ;;  %v2514_v60 = vshrl.u32 %v2230_v18, 16 }
 0x19e   : > { %2647 = vmatmul.bf16.gmra.mxu1 %v2575_v25  ;;  %v2766_v12 = vsel %vm4560_vm5, %v2761_v27, %v2765_v48  ;;  %v2517_v41 = vshll.u32 %v2230_v18, 16  ;;  %v2275_v42 = vsel %vm4524_vm2, %v3789_v3, %v2274_v35  ;;  %v2532_v45 = vshrl.u32 %v2231_v24, 16 }
 0x19f   : > { %v2816_v39 = vunpack.c.l.b16 %v2766_v12  ;;  %v2994_v36 = vpack.c.b16 %v2989_v15, %v2988_v2  ;;  %v2279_v43 = vsel %vm4524_vm2, %v3790_v34, %v2278_v53  ;;  %v2535_v13 = vshll.u32 %v2231_v24, 16  ;;  %v2682_v24 = vld [vmem:[#allocation3 + $0x4c] sm:$0x1] }
 0x1a0   : > { %v4877_v29 = vpop.f32.mrf.mxu0  ;;  %v2302_v33 = vunpack.c.l.b16 %v2275_v42  ;;  %v2303_v40 = vunpack.c.l.b16 %v2279_v43  ;;  %v2516_v55 = vrot.slane %v2514_v60, 5  ;;  %v2519_v49 = vrot.slane %v2517_v41, 6 }
 0x1a1   : > { %v2821_v32 = vpack.c.b16 %v2816_v39, %v2815_v46  ;;  %v2523_v23 = vshrl.u32 %v2403_v59, 16  ;;  %v2526_v52 = vshll.u32 %v2403_v59, 16  ;;  %v2534_v44 = vrot.slane %v2532_v45, 5 }
 0x1a2   : > { %v2307_v57 = vpack.c.b16 %v2303_v40, %v2302_v33  ;;  %v2537_v54 = vrot.slane %v2535_v13, 6  ;;  %v2541_v11 = vshrl.u32 %v2404_v38, 16  ;;  %v2544_v51 = vshll.u32 %v2404_v38, 16 }
 0x1a3   : > { %2893 = vmatmul.bf16.gmra.mxu2 %v2821_v32  ;;  %v2520_v28 = vor.u32 %v2519_v49, %v2516_v55  ;;  %v2525_v0 = vrot.slane %v2523_v23, 5  ;;  %v2528_v4 = vrot.slane %v2526_v52, 6  ;;  %v2768_v61 = vshrl.u32 %v2679_v19, 16 }
 0x1a4   : > { %3066 = vmatmul.bf16.gmra.mxu3 %v2994_v36  ;;  %2383 = vmatmul.bf16.gmra.mxu0 %v2307_v57  ;;  %v2538_v58 = vor.u32 %v2537_v54, %v2534_v44  ;;  %v2543_v6 = vrot.slane %v2541_v11, 5  ;;  %v2546_v9 = vrot.slane %v2544_v51, 6  ;;  %v2771_v10 = vshll.u32 %v2679_v19, 16  ;;  %v4879_v18 = vpop.f32.mrf.mxu1  ;;  %v2919_v36 = vld [vmem:[#allocation3 + $0x48] sm:$0xe] }
 0x1a5   : > { %v2521_v26 = vrot.slane %v2520_v28, 4  ;;  %v2529_v1 = vor.u32 %v2528_v4, %v2525_v0  ;;  %v2770_v14 = vrot.slane %v2768_v61, 4  ;;  %v2777_v50 = vshll.u32 %v2680_v22, 16  ;;  %v3085_v54 = vld [vmem:[#allocation3 + $0x14] sm:$0x3] }
 0x1a6   : > { %v2539_v20 = vrot.slane %v2538_v58, 4  ;;  %v2547_v21 = vor.u32 %v2546_v9, %v2543_v6  ;;  %v2773_v25 = vrot.slane %v2771_v10, 5  ;;  %v2782_v27 = vshrl.u32 %v2681_v5, 16 }
 0x1a7   : > { %v2530_v48 = vsel %vm4655_vm8, %v2521_v26, %v2529_v1  ;;  %v2779_v30 = vrot.slane %v2777_v50, 5  ;;  %v2785_v46 = vshll.u32 %v2681_v5, 16  ;;  %v2791_v2 = vshll.u32 %v2682_v24, 16  ;;  %v3086_v1 = vld [vmem:[#allocation3 + $0x1c] sm:$0x3] }
 0x1a8   : > { %v2548_v15 = vsel %vm4655_vm8, %v2539_v20, %v2547_v21  ;;  %v2571_v3 = vunpack.c.l.b16 %v2530_v48  ;;  %v2774_v12 = vor.u32 %v2773_v25, %v2770_v14  ;;  %v2784_v35 = vrot.slane %v2782_v27, 4  ;;  %v4885_v41 = vpop.f32.mrf.mxu0  ;;  %v3091_v27 = vld [vmem:[#allocation3 + $0x44] sm:$0x3] }
 0x1a9   : > { %v2572_v34 = vunpack.c.l.b16 %v2548_v15  ;;  %v2787_v53 = vrot.slane %v2785_v46, 5  ;;  %v2793_v39 = vrot.slane %v2791_v2, 5  ;;  %v3893_v60 = vrot.slane %v2918_v16, 9  ;;  %v3092_v2 = vld [vmem:[#allocation3 + $0x4c] sm:$0x3] }
 0x1aa   : > { %v2775_v59 = vrot.slane %v2774_v12, 4  ;;  %v2962_v42 = vrot.slane %v2680_v22, 5  ;;  %v3894_v43 = vrot.slane %v2919_v36, 9  ;;  %v2966_v45 = vrot.slane %v2682_v24, 5 }
 0x1ab   : > { %v2576_v13 = vpack.c.b16 %v2572_v34, %v2571_v3  ;;  %v2788_v38 = vor.u32 %v2787_v53, %v2784_v35  ;;  %v3202_v32 = vshrl.u32 %v2918_v16, 16  ;;  %v3205_v33 = vshll.u32 %v2918_v16, 16 }
 0x1ac   : > { %v2780_v40 = vsel %vm4560_vm5, %v2775_v59, %v2779_v30  ;;  %v2963_v55 = vsel %vm4524_vm2, %v3893_v60, %v2962_v42  ;;  %v2967_v19 = vsel %vm4524_vm2, %v3894_v43, %v2966_v45  ;;  %v3220_v49 = vshrl.u32 %v2919_v36, 16  ;;  %v1689_v58 = vpop.f32.mrf.mxu1 }
 0x1ad   : > { %v2789_v23 = vrot.slane %v2788_v38, 4  ;;  %v2817_v52 = vunpack.c.l.b16 %v2780_v40  ;;  %v2990_v44 = vunpack.c.l.b16 %v2963_v55  ;;  %v2991_v57 = vunpack.c.l.b16 %v2967_v19  ;;  %v1951_v0 = vpop.f32.mrf.mxu2  ;;  %v3087_v40 = vld [vmem:[#allocation3 + $0x24] sm:$0x3] }
 0x1ae   : > { %2652 = vmatmul.bf16.gmra.mxu1 %v2576_v13  ;;  %v3204_v11 = vrot.slane %v3202_v32, 5  ;;  %v3207_v51 = vrot.slane %v3205_v33, 6  ;;  %v3222_v22 = vrot.slane %v3220_v49, 5  ;;  %v3223_v28 = vshll.u32 %v2919_v36, 16 }
 0x1af   : > { %v2794_v4 = vsel %vm4560_vm5, %v2789_v23, %v2793_v39  ;;  %v2995_v5 = vpack.c.b16 %v2991_v57, %v2990_v44  ;;  %v3094_v61 = vshrl.u32 %v4805_v7, 16  ;;  %v3097_v62 = vshll.u32 %v4805_v7, 16 }
 0x1b0   : > { %v2818_v6 = vunpack.c.l.b16 %v2794_v4  ;;  %v3208_v9 = vor.u32 %v3207_v51, %v3204_v11  ;;  %v3225_v10 = vrot.slane %v3223_v28, 6  ;;  %v3103_v26 = vshrl.u32 %v3085_v54, 16  ;;  %v1599_v15 = vpop.f32.mrf.mxu0 }
 0x1b1   : > { %v3096_v14 = vrot.slane %v3094_v61, 5  ;;  %v3099_v50 = vrot.slane %v3097_v62, 6  ;;  %v3106_v16 = vshll.u32 %v3085_v54, 16  ;;  %v3112_v20 = vshrl.u32 %v4807_v8, 16 }
 0x1b2   : > { %v2822_v21 = vpack.c.b16 %v2818_v6, %v2817_v52  ;;  %v3209_v24 = vrot.slane %v3208_v9, 4  ;;  %v3226_v56 = vor.u32 %v3225_v10, %v3222_v22  ;;  %v3105_v25 = vrot.slane %v3103_v26, 5  ;;  %v3088_v9 = vld [vmem:[#allocation3 + $0x2c] sm:$0x3] }
 0x1b3   : > { %v3100_v48 = vor.u32 %v3099_v50, %v3096_v14  ;;  %v3108_v30 = vrot.slane %v3106_v16, 6  ;;  %v3114_v7 = vrot.slane %v3112_v20, 5  ;;  %v3115_v46 = vshll.u32 %v4807_v8, 16 }
 0x1b4   : > { %3071 = vmatmul.bf16.gmra.mxu3 %v2995_v5  ;;  %2898 = vmatmul.bf16.gmra.mxu2 %v2822_v21  ;;  %v3227_v3 = vrot.slane %v3226_v56, 4  ;;  %v3121_v12 = vshrl.u32 %v3086_v1, 16  ;;  %v3124_v35 = vshll.u32 %v3086_v1, 16  ;;  %v1688_v34 = vadd.f32 %v4879_v18, %v4877_v29  ;;  %v2196_v59 = vpop.f32.mrf.mxu3 }
 0x1b5   : > { %v3101_v53 = vrot.slane %v3100_v48, 4  ;;  %v3109_v39 = vor.u32 %v3108_v30, %v3105_v25  ;;  %v3117_v36 = vrot.slane %v3115_v46, 6  ;;  %v3211_v60 = vshrl.u32 %v3091_v27, 16  ;;  %v1953_v18 = vpop.f32.mrf.mxu2 }
 0x1b6   : > { %v3123_v42 = vrot.slane %v3121_v12, 5  ;;  %v3126_v43 = vrot.slane %v3124_v35, 6  ;;  %v3214_v45 = vshll.u32 %v3091_v27, 16  ;;  %v3229_v13 = vshrl.u32 %v3092_v2, 16 }
 0x1b7   : > { %v3110_v8 = vsel %vm4655_vm8, %v3101_v53, %v3109_v39  ;;  %v3118_v38 = vor.u32 %v3117_v36, %v3114_v7  ;;  %v3213_v32 = vrot.slane %v3211_v60, 5  ;;  %v3232_v33 = vshll.u32 %v3092_v2, 16 }
 0x1b8   : > { %v3127_v55 = vor.u32 %v3126_v43, %v3123_v42  ;;  %v3253_v19 = vunpack.c.l.b16 %v3110_v8  ;;  %v3216_v49 = vrot.slane %v3214_v45, 6  ;;  %v3231_v29 = vrot.slane %v3229_v13, 5 }
 0x1b9   : > { %v3119_v23 = vrot.slane %v3118_v38, 4  ;;  %v3234_v52 = vrot.slane %v3232_v33, 6  ;;  %v1971_v44 = vadd.f32 %v1951_v0, %v1688_v34  ;;  %v1690_v57 = vadd.f32 %v1689_v58, %v4885_v41  ;;  %v3090_v38 = vld [vmem:[#allocation3 + $0x3c] sm:$0x3] }
 0x1ba   : > { %v1692_v54 = vpop.f32.mrf.mxu1  ;;  %v3217_v11 = vor.u32 %v3216_v49, %v3213_v32  ;;  %v3130_v51 = vshrl.u32 %v4829_v31, 16  ;;  %v3133_v22 = vshll.u32 %v4829_v31, 16  ;;  %v3139_v28 = vshrl.u32 %v3087_v40, 16  ;;  %v1601_v31 = vpop.f32.mrf.mxu0 }
 0x1bb   : > { %v3128_v4 = vsel %vm4655_vm8, %v3119_v23, %v3127_v55  ;;  %v3235_v5 = vor.u32 %v3234_v52, %v3231_v29  ;;  %v1972_v61 = vadd.f32 %v1953_v18, %v1690_v57  ;;  %v4908_v62 = vadd.f32 %v2196_v59, %v1971_v44 }
 0x1bc   : > { %v3254_v6 = vunpack.c.l.b16 %v3128_v4  ;;  %v3218_v0 = vsel %vm4655_vm8, %v3209_v24, %v3217_v11  ;;  %v3132_v41 = vrot.slane %v3130_v51, 5  ;;  %v3135_v58 = vrot.slane %v3133_v22, 6  ;;  %v2198_v25 = vpop.f32.mrf.mxu3 }
 0x1bd   : > { %v3236_v10 = vsel %vm4655_vm8, %v3227_v3, %v3235_v5  ;;  %v3142_v26 = vshll.u32 %v3087_v40, 16  ;;  %v3259_v14 = vunpack.c.l.b16 %v3218_v0  ;;  %v3148_v16 = vshrl.u32 %v4831_v37, 16 }
 0x1be   : > { %v3261_v1 = vpack.c.b16 %v3254_v6, %v3253_v19  ;;  %v3260_v50 = vunpack.c.l.b16 %v3236_v10  ;;  %v3151_v20 = vshll.u32 %v4831_v37, 16  ;;  %v3157_v21 = vshrl.u32 %v3088_v9, 16  ;;  %v3089_v19 = vld [vmem:[#allocation3 + $0x34] sm:$0x3] }
 0x1bf   : > { %v3160_v56 = vshll.u32 %v3088_v9, 16  ;;  %v3136_v24 = vor.u32 %v3135_v58, %v3132_v41  ;;  %v3141_v27 = vrot.slane %v3139_v28, 5  ;;  %v3150_v48 = vrot.slane %v3148_v16, 5 }
 0x1c0   : > { %3325 = vmatmul.bf16.vlgmr.msrb.gmra.mxu0 %v3261_v1  ;;  %v1693_v30 = vadd.f32 %v1692_v54, %v1599_v15  ;;  %v3144_v7 = vrot.slane %v3142_v26, 6  ;;  %v3153_v46 = vrot.slane %v3151_v20, 6  ;;  %v3159_v2 = vrot.slane %v3157_v21, 5 }
 0x1c1   : > { %v3162_v3 = vrot.slane %v3160_v56, 6  ;;  %v3264_v35 = vpack.c.b16 %v3260_v50, %v3259_v14  ;;  %v4916_v34 = vadd.f32 %v2198_v25, %v1972_v61  ;;  %v3137_v37 = vrot.slane %v3136_v24, 4 }
 0x1c2   : > { %v1694_v12 = vpop.f32.mrf.mxu1  ;;  %v3154_v39 = vor.u32 %v3153_v46, %v3150_v48  ;;  %v3145_v60 = vor.u32 %v3144_v7, %v3141_v27  ;;  %v3184_v42 = vshrl.u32 %v4857_v47, 16  ;;  %v3187_v43 = vshll.u32 %v4857_v47, 16 }
 0x1c3   : > { %v1695_v53 = vadd.f32 %v1694_v12, %v1601_v31  ;;  %v3163_v36 = vor.u32 %v3162_v3, %v3159_v2  ;;  %v3166_v32 = vshrl.u32 %v4853_v63, 16  ;;  %v3169_v33 = vshll.u32 %v4853_v63, 16 }
 0x1c4   : > { %3340 = vmatmul.bf16.vlgmr.msrb.gmra.mxu2 %v3264_v35  ;;  %v3155_v59 = vrot.slane %v3154_v39, 4  ;;  %v3146_v40 = vsel %vm4655_vm8, %v3137_v37, %v3145_v60  ;;  %v3186_v49 = vrot.slane %v3184_v42, 5  ;;  %v3189_v29 = vrot.slane %v3187_v43, 6 }
 0x1c5   : > { %v3193_v18 = vshrl.u32 %v3090_v38, 16  ;;  %v3196_v47 = vshll.u32 %v3090_v38, 16  ;;  %v3255_v23 = vunpack.c.l.b16 %v3146_v40  ;;  %v3168_v52 = vrot.slane %v3166_v32, 5 }
 0x1c6   : > { %v3164_v15 = vsel %vm4655_vm8, %v3155_v59, %v3163_v36  ;;  %v3171_v44 = vrot.slane %v3169_v33, 6  ;;  %v3175_v57 = vshrl.u32 %v3089_v19, 16  ;;  %v3178_v54 = vshll.u32 %v3089_v19, 16 }
 0x1c7   : > { %v3256_v55 = vunpack.c.l.b16 %v3164_v15  ;;  %v3190_v28 = vor.u32 %v3189_v29, %v3186_v49  ;;  %v3195_v4 = vrot.slane %v3193_v18, 5  ;;  %v3198_v63 = vrot.slane %v3196_v47, 6 }
 0x1c8   : > { %v1956_v45 = vpop.f32.mrf.mxu2  ;;  %v1604_v13 = vpop.f32.mrf.mxu0  ;;  %v3172_v0 = vor.u32 %v3171_v44, %v3168_v52  ;;  %v3177_v9 = vrot.slane %v3175_v57, 5  ;;  %v3180_v41 = vrot.slane %v3178_v54, 6 }
 0x1c9   : > { %v1973_v8 = vadd.f32 %v1956_v45, %v1693_v30  ;;  %v3262_v11 = vpack.c.b16 %v3256_v55, %v3255_v23  ;;  %v3191_v26 = vrot.slane %v3190_v28, 4  ;;  %v3199_v31 = vor.u32 %v3198_v63, %v3195_v4 }
 0x1ca   : > { %v3173_v1 = vrot.slane %v3172_v0, 4  ;;  %v3181_v14 = vor.u32 %v3180_v41, %v3177_v9 }
 0x1cb   : > { %v3200_v50 = vsel %vm4655_vm8, %v3191_v26, %v3199_v31 }
 0x1cc   : > { %v3182_v21 = vsel %vm4655_vm8, %v3173_v1, %v3181_v14  ;;  %v3258_v25 = vunpack.c.l.b16 %v3200_v50  ;;  %v4964_v14 = vld [vmem:[%s5039_s4] ss:$0 sm:$0xff] }
 0x1cd   : > { %v3257_v48 = vunpack.c.l.b16 %v3182_v21 }
 0x1cf   : > { %v3263_v7 = vpack.c.b16 %v3258_v25, %v3257_v48 }
 0x1d0   : > { %v1958_v51 = vpop.f32.mrf.mxu2  ;;  %v2201_v22 = vpop.f32.mrf.mxu3  ;;  %3330 = vmatmul.bf16.gmra.mxu0 %v3262_v11 }
 0x1d1   : > { %v1974_v5 = vadd.f32 %v1958_v51, %v1695_v53  ;;  %v4926_v61 = vadd.f32 %v2201_v22, %v1973_v8  ;;  %v1606_v6 = vpop.f32.mrf.mxu0 }
 0x1d2   : > { %v1697_v58 = vpop.f32.mrf.mxu1 }
 0x1d3   : > { %v1698_v10 = vadd.f32 %v1697_v58, %v1604_v13 }
 0x1d8   : > { %v2203_v16 = vpop.f32.mrf.mxu3 }
 0x1d9   : > { %v4930_v20 = vadd.f32 %v2203_v16, %v1974_v5 }
 0x1da   : > { %v1699_v56 = vpop.f32.mrf.mxu1 }
 0x1db   : > { %v1700_v24 = vadd.f32 %v1699_v56, %v1606_v6  ;;  %v1609_v27 = vpop.f32.mrf.mxu0 }
 0x1de   : > { %v1961_v30 = vpop.f32.mrf.mxu2 }
 0x1df   : > { %v1975_v46 = vadd.f32 %v1961_v30, %v1698_v10 }
 0x1e0   : > { %3335 = vmatmul.bf16.gmra.mxu0 %v3263_v7 }
 0x1e3   : > { %v1611_v2 = vpop.f32.mrf.mxu0 }
 0x1e5   : > { %v2206_v3 = vpop.f32.mrf.mxu3 }
 0x1e6   : > { %v1963_v12 = vpop.f32.mrf.mxu2  ;;  %v4934_v35 = vadd.f32 %v2206_v3, %v1975_v46  ;;  %v1702_v39 = vpop.f32.mrf.mxu1 }
 0x1e7   : > { %v1976_v53 = vadd.f32 %v1963_v12, %v1700_v24  ;;  %v1703_v60 = vadd.f32 %v1702_v39, %v1609_v27 }
 0x1ed   : > { %v2208_v36 = vpop.f32.mrf.mxu3 }
 0x1ee   : > { %v4936_v37 = vadd.f32 %v2208_v36, %v1976_v53  ;;  %v2369_v17 = vpop.f32.mrf.mxu0  ;;  %v1704_v43 = vpop.f32.mrf.mxu1 }
 0x1ef   : > { %v1705_v13 = vadd.f32 %v1704_v43, %v1611_v2  ;;  %v2389_v41 = vadd.f32 %v2369_v17, %v4908_v62 }
 0x1f2   : > { %v1966_v59 = vpop.f32.mrf.mxu2 }
 0x1f3   : > { %v1977_v42 = vadd.f32 %v1966_v59, %v1703_v60 }
 0x1f6   : > { %v2371_v45 = vpop.f32.mrf.mxu0 }
 0x1f7   : > { %v2211_v15 = vpop.f32.mrf.mxu3  ;;  %v2390_v56 = vadd.f32 %v2371_v45, %v4916_v34 }
 0x1f8   : > { %v2222_v21 = vadd.f32 %v2211_v15, %v1977_v42 }
 0x1f9   : > { %v2638_v33 = vpop.f32.mrf.mxu1 }
 0x1fa   : > { %v1968_v8 = vpop.f32.mrf.mxu2  ;;  %v2658_v26 = vadd.f32 %v2638_v33, %v2389_v41 }
 0x1fb   : > { %v1978_v38 = vadd.f32 %v1968_v8, %v1705_v13 }
 0x1ff   : > { %v2213_v32 = vpop.f32.mrf.mxu3 }
 0x200   : > { %v2223_v39 = vadd.f32 %v2213_v32, %v1978_v38 }
 0x201   : > { %v2374_v40 = vpop.f32.mrf.mxu0  ;;  %v2640_v49 = vpop.f32.mrf.mxu1 }
 0x202   : > { %v2659_v62 = vadd.f32 %v2640_v49, %v2390_v56  ;;  %v2391_v34 = vadd.f32 %v2374_v40, %v4926_v61 }
 0x204   : > { %v2884_v55 = vpop.f32.mrf.mxu2 }
 0x205   : > { %v2904_v31 = vadd.f32 %v2884_v55, %v2658_v26 }
 0x207   : > { %v3057_v19 = vpop.f32.mrf.mxu3 }
 0x208   : > { %v3077_v1 = vadd.f32 %v3057_v19, %v2904_v31 }
 0x209   : > { %v4938_v18 = vpop.f32.mrf.mxu0 }
 0x20a   : > { %v2392_v49 = vadd.f32 %v4938_v18, %v4930_v20 }
 0x20b   : > { %v2643_v52 = vpop.f32.mrf.mxu1 }
 0x20c   : > { %v2886_v29 = vpop.f32.mrf.mxu2  ;;  %v2660_v42 = vadd.f32 %v2643_v52, %v2391_v34 }
 0x20d   : > { %v2905_v7 = vadd.f32 %v2886_v29, %v2659_v62 }
 0x20f   : > { %v3059_v47 = vpop.f32.mrf.mxu3 }
 0x210   : > { %v3078_v3 = vadd.f32 %v3059_v47, %v2905_v7 }
 0x211   : > { %v4940_v44 = vpop.f32.mrf.mxu0 }
 0x212   : > { %v2393_v18 = vadd.f32 %v4940_v44, %v4934_v35 }
 0x213   : > { %v2645_v11 = vpop.f32.mrf.mxu1 }
 0x215   : > { %v2889_v23 = vpop.f32.mrf.mxu2 }
 0x216   : > { %v2906_v13 = vadd.f32 %v2889_v23, %v2660_v42  ;;  %v2661_v23 = vadd.f32 %v2645_v11, %v2392_v49 }
 0x217   : > { %v3062_v57 = vpop.f32.mrf.mxu3 }
 0x218   : > { %v3079_v38 = vadd.f32 %v3062_v57, %v2906_v13 }
 0x219   : > { %v4944_v51 = vpop.f32.mrf.mxu0 }
 0x21a   : > { %v2394_v56 = vadd.f32 %v4944_v51, %v4936_v37 }
 0x21b   : > { %v4950_v4 = vpop.f32.mrf.mxu1 }
 0x21d   : > { %v4942_v54 = vpop.f32.mrf.mxu2 }
 0x21e   : > { %v2907_v57 = vadd.f32 %v4942_v54, %v2661_v23 }
 0x21f   : > { %v4946_v22 = vpop.f32.mrf.mxu3 }
 0x220   : > { %v3080_v26 = vadd.f32 %v4946_v22, %v2907_v57 }
 0x221   : > { %v2384_v63 = vpop.f32.mrf.mxu0 }
 0x222   : > { %v2395_v27 = vadd.f32 %v2384_v63, %v2222_v21 }
 0x223   : > { %v4956_v0 = vpop.f32.mrf.mxu1 }
 0x224   : > { %v2663_v35 = vadd.f32 %v4956_v0, %v2394_v56 }
 0x226   : > { %v4948_v28 = vpop.f32.mrf.mxu2 }
 0x227   : > { %v4954_v6 = vpop.f32.mrf.mxu3 }
 0x229   : > { %v2386_v9 = vpop.f32.mrf.mxu0 }
 0x22a   : > { %v2396_v43 = vadd.f32 %v2386_v9, %v2223_v39 }
 0x22b   : > { %v2653_v50 = vpop.f32.mrf.mxu1 }
 0x22c   : > { %v2664_v46 = vadd.f32 %v2653_v50, %v2395_v27 }
 0x22e   : > { %v4952_v5 = vpop.f32.mrf.mxu2 }
 0x22f   : > { %v4959_v10 = vpop.f32.mrf.mxu3 }
 0x233   : > { %v2655_v60 = vpop.f32.mrf.mxu1 }
 0x234   : > { %v2665_v8 = vadd.f32 %v2655_v60, %v2396_v43 }
 0x237   : > { %v2899_v58 = vpop.f32.mrf.mxu2  ;;  %v3072_v30 = vpop.f32.mrf.mxu3 }
 0x238   : > { %v2910_v12 = vadd.f32 %v2899_v58, %v2664_v46 }
 0x23a   : > { %v3083_v36 = vadd.f32 %v3072_v30, %v2910_v12 }
 0x23d   : > { %v3326_v16 = vpop.f32.mrf.mxu0 }
 0x23e   : > { %v3346_v25 = vadd.f32 %v3326_v16, %v3077_v1  ;;  %v2662_v1 = vadd.f32 %v4950_v4, %v2393_v18  ;;  %v2909_v4 = vadd.f32 %v4952_v5, %v2663_v35 }
 0x23f   : > { %v2901_v24 = vpop.f32.mrf.mxu2  ;;  %v3074_v19 = vpop.f32.mrf.mxu3 }
 0x240   : > { %v3358_v48 = vadd.f32 %v4964_v14, %v3346_v25  ;;  %v2911_v32 = vadd.f32 %v2901_v24, %v2665_v8  ;;  %v2908_v54 = vadd.f32 %v4948_v28, %v2662_v1  ;;  %v3082_v28 = vadd.f32 %v4959_v10, %v2909_v4 }
 0x242   : > { %v3366_v2 = vmax.f32 %v3358_v48, 0.0  ;;  %v3084_v29 = vadd.f32 %v3074_v19, %v2911_v32  ;;  %v3081_v22 = vadd.f32 %v4954_v6, %v2908_v54 }
 0x244   : > { %3374 = vst [vmem:[%s4969_s13] sm:$0xff] %v3366_v2 }
 0x245   : > { %v3328_v53 = vpop.f32.mrf.mxu0 }
 0x246   : > { %v3347_v17 = vadd.f32 %v3328_v53, %v3078_v3 }
 0x247   : > { %v3341_v59 = vpop.f32.mrf.mxu2 }
 0x248   : > { %v3359_v15 = vadd.f32 %v4964_v14, %v3347_v17  ;;  %v3352_v45 = vadd.f32 %v3341_v59, %v3083_v36 }
 0x24a   : > { %v3367_v33 = vmax.f32 %v3359_v15, 0.0  ;;  %v3364_v55 = vadd.f32 %v4964_v14, %v3352_v45 }
 0x24c   : > { %3375 = vst [vmem:[%s4969_s13 + $0x8] sm:$0xff] %v3367_v33  ;;  %v3372_v61 = vmax.f32 %v3364_v55, 0.0 }
 0x24d   : > { %v3331_v40 = vpop.f32.mrf.mxu0 }
 0x24e   : > { %3380 = vst [vmem:[%s4969_s13 + $0x30] sm:$0xff] %v3372_v61  ;;  %v3348_v47 = vadd.f32 %v3331_v40, %v3079_v38 }
 0x24f   : > { %v3343_v52 = vpop.f32.mrf.mxu2 }
 0x250   : > { %v3360_v63 = vadd.f32 %v4964_v14, %v3348_v47  ;;  %v3353_v9 = vadd.f32 %v3343_v52, %v3084_v29 }
 0x252   : > { %v3368_v41 = vmax.f32 %v3360_v63, 0.0  ;;  %v3365_v58 = vadd.f32 %v4964_v14, %v3353_v9 }
 0x254   : > { %3376 = vst [vmem:[%s4969_s13 + $0x10] sm:$0xff] %v3368_v41  ;;  %v3373_v31 = vmax.f32 %v3365_v58, 0.0 }
 0x255   : > { %v3333_v20 = vpop.f32.mrf.mxu0 }
 0x256   : > { %3381 = vst [vmem:[%s4969_s13 + $0x38] sm:$0xff] %v3373_v31  ;;  %v3349_v11 = vadd.f32 %v3333_v20, %v3080_v26 }
 0x258   : > { %v3361_v50 = vadd.f32 %v4964_v14, %v3349_v11 }
 0x25a   : > { %v3369_v16 = vmax.f32 %v3361_v50, 0.0 }
 0x25c   : > { %3377 = vst [vmem:[%s4969_s13 + $0x18] sm:$0xff] %v3369_v16 }
 0x25d   : > { %v3336_v21 = vpop.f32.mrf.mxu0 }
 0x25e   : > { %v3350_v25 = vadd.f32 %v3336_v21, %v3081_v22 }
 0x260   : > { %v3362_v44 = vadd.f32 %v4964_v14, %v3350_v25 }
 0x262   : > { %v3370_v24 = vmax.f32 %v3362_v44, 0.0 }
 0x264   : > { %3378 = vst [vmem:[%s4969_s13 + $0x20] sm:$0xff] %v3370_v24 }
 0x265   : > { %v3338_v37 = vpop.f32.mrf.mxu0 }
 0x266   : > { %v3351_v51 = vadd.f32 %v3338_v37, %v3082_v28 }
 0x268   : > { %v3363_v6 = vadd.f32 %v4964_v14, %v3351_v51 }
 0x26a   : > { %v3371_v0 = vmax.f32 %v3363_v6, 0.0 }
 0x26c   : > { %3379 = vst [vmem:[%s4969_s13 + $0x28] sm:$0xff] %v3371_v0 }
 0x26d   : > { %4277 = shalt.err (!%p4274_p10)
}
 0x26e   : > { %s4327_s8 = smov 128   ;;  %s4328_s12 = smov 8  }
 0x26f   : > { %4096 = dma.vmem_to_hbm [thread:$0]  (%p4431_p3), %s3396_s7, 1024, %s3398_s26, %s3383_s22, %s4327_s8, %s4327_s8, %s4328_s12  }
 0x270 PF: > { %s3412_s13 = sand.u32 1, %s4308_s18   ;;  %p5054_p12 = scmp.ge.s32.totalorder %s4320_s21, 2 }
 0x271   : > { %s3413_s15 = scalar_lea.sflag [#allocation6], %s3412_s13 }
 0x272   : > { %p4110_p13 = pnand %p5054_p12, %p4394_p6 }
 0x274   : > { %p4111_p0 = pneg %p4110_p13 }
 0x276   : > { %4303 = dma.done.wait (%p4111_p0), %s3413_s15, 1024  }
 0x277   : > { %4305 = vsyncadd (%p4111_p0), %s3413_s15, 4294966272  ;;  %p19_p5 = scmp.ge.s32.totalorder %s4421_s14, 4   ;;  %s5055_s18 = smov %s4312_s19 }
 0x278   : > { %s5056_s19 = smov %s4316_s20  ;;  %s5057_s20 = smov %s4437_s23 }
 0x279   : > { %s5058_s21 = smov %s4421_s14  ;;  %21 = sbr.rel (!%p19_p5) target bundleno = 6 (0x6), region = 98 }
 0x27e   :  { %3419 = vsyncpa [#allocation5], 1 }
 0x27f   :  { %3421 = vsyncpa [#allocation5 + $0x1], 1 }
 0x280   :  { %3422 = vsyncpa [#allocation8], 1 }
 0x281   :  { %3423 = vsyncpa [#allocation6], 1 }
 0x282   :  { %3425 = vsyncpa [#allocation6 + $0x1], 1 }

</bundles_post_ra>
